<compile_context>
chip_gen: v7x
topology: tpu7x:2x2x1
jax: 0.10.0
libtpu: 0.0.40
codegen_flags: <defaults>
</compile_context>

<pallas_src>
import jax
import jax.numpy as jnp
from jax.experimental import pallas as pl
from jax.experimental.pallas import tpu as pltpu


def _round_up(n, m):
    return ((n + m - 1) // m) * m


def _pad_axis(x, axis, target):
    pad = target - x.shape[axis]
    if pad <= 0:
        return x
    widths = [(0, 0)] * x.ndim
    widths[axis] = (0, pad)
    return jnp.pad(x, widths)


def _attend_kernel(state_ref, enc_ref,
                   pw1, pb1, pw2, pb2, pw3, pb3,
                   sw1, sb1, sw2, sb2, sw3, sb3,
                   ctx_ref, probs_ref):
    f32 = jnp.float32
    bf16 = jnp.bfloat16
    TB, T, E = enc_ref.shape

    # ---- phi MLP on the state block: (TB, S) -> (TB, Op) --------------------
    q = jnp.dot(state_ref[...], pw1[...], preferred_element_type=f32) + pb1[...]
    q = jnp.maximum(q, 0.0).astype(bf16)
    q = jnp.dot(q, pw2[...], preferred_element_type=f32) + pb2[...]
    q = jnp.maximum(q, 0.0).astype(bf16)
    q = jnp.dot(q, pw3[...], preferred_element_type=f32) + pb3[...]       # (TB, Op) f32

    # ---- psi MLP on the flattened encoded block: (TB*T, E) -> (TB*T, Op) ----
    enc = enc_ref[...].reshape(TB * T, E)                                 # bf16
    h = jnp.dot(enc, sw1[...], preferred_element_type=f32) + sb1[...]
    h = jnp.maximum(h, 0.0).astype(bf16)
    h = jnp.dot(h, sw2[...], preferred_element_type=f32) + sb2[...]
    h = jnp.maximum(h, 0.0).astype(bf16)
    sup = jnp.dot(h, sw3[...], preferred_element_type=f32) + sb3[...]     # (TB*T, Op) f32
    sup3 = sup.reshape(TB, T, -1)                                         # (TB, T, Op)

    # ---- scores: broadcast-multiply + lane reduce over Op -> (TB, T) --------
    scores = jnp.sum(sup3 * q[:, None, :], axis=-1)                       # (TB, T) f32

    # ---- softmax over T (the lane axis); divide goes to the EUP -------------
    m = jnp.max(scores, axis=-1, keepdims=True)
    e = jnp.exp(scores - m)
    denom = jnp.sum(e, axis=-1, keepdims=True)
    probs = e * pl.reciprocal(denom, approx=True)                         # (TB, T)

    # ---- context: batched (1,T)@(T,Op) matmul on the MXU -> (TB, Op) --------
    ctx = jnp.einsum("bqt,bto->bqo", probs[:, None, :], sup3,
                     preferred_element_type=f32)[:, 0, :]

    ctx_ref[...] = ctx.astype(ctx_ref.dtype)
    probs_ref[...] = probs.astype(probs_ref.dtype)


def attend(state, encoded, params, *, block_b=8):
    """state: (B, S) f32, encoded: (B, T, E) f32.

    params holds (in, out)-layout weights and (1, out) biases (see make_params).
    Returns (context (B, O), attention_probs (B, T, 1)) like Attend.forward.
    """
    B, S = state.shape
    _, T, E = encoded.shape
    H = params["pw1"].shape[1]
    O = params["pw3"].shape[1]
    Hp = _round_up(H, 128)
    Op = _round_up(O, 128)

    assert block_b % 8 == 0, "block_b must be a multiple of 8 (f32 sublane)"
    TB = block_b
    Bp = _round_up(B, TB)

    # Zero-pad hidden/output dims to full 128 lanes and cast weights to bf16.
    # Padded hidden units stay exactly zero through bias + ReLU, so results are
    # unchanged; padded output columns are sliced off in the wrapper.
    def prep_w(w, out_t, in_t=None):
        w = _pad_axis(w, 1, out_t)
        if in_t is not None:
            w = _pad_axis(w, 0, in_t)
        return w.astype(jnp.bfloat16)

    def prep_b(b, out_t):
        return _pad_axis(b, 1, out_t).astype(jnp.float32)

    weight_args = [
        prep_w(params["pw1"], Hp),     prep_b(params["pb1"], Hp),
        prep_w(params["pw2"], Hp, Hp), prep_b(params["pb2"], Hp),
        prep_w(params["pw3"], Op, Hp), prep_b(params["pb3"], Op),
        prep_w(params["sw1"], Hp),     prep_b(params["sb1"], Hp),
        prep_w(params["sw2"], Hp, Hp), prep_b(params["sb2"], Hp),
        prep_w(params["sw3"], Op, Hp), prep_b(params["sb3"], Op),
    ]

    # bf16 inputs halve HBM traffic for the dominant (B, T, E) read.
    state_p = _pad_axis(state.astype(jnp.bfloat16), 0, Bp)
    enc_p = _pad_axis(encoded.astype(jnp.bfloat16), 0, Bp)

    full = lambda arr: pl.BlockSpec(arr.shape, lambda b: (0,) * arr.ndim)

    in_specs = (
        [pl.BlockSpec((TB, S), lambda b: (b, 0)),
         pl.BlockSpec((TB, T, E), lambda b: (b, 0, 0))]
        + [full(w) for w in weight_args]
    )
    out_specs = [
        pl.BlockSpec((TB, Op), lambda b: (b, 0)),   # lane-dense ctx (Op = 128k)
        pl.BlockSpec((TB, T), lambda b: (b, 0)),    # lane-dense probs (T on lanes)
    ]

    # Explicit VMEM budget (v7x has 64 MiB physical / 32 MiB scoped default).
    bytes_per_step = (
        state_p.dtype.itemsize * TB * S
        + enc_p.dtype.itemsize * TB * T * E
        + 4 * TB * Op + 4 * TB * T
        + sum(int(w.size) * w.dtype.itemsize for w in weight_args)
    )
    vmem_limit = int(min(max(4 * bytes_per_step + (8 << 20), 32 << 20), 48 << 20))

    ctx, probs = pl.pallas_call(
        _attend_kernel,
        out_shape=(jax.ShapeDtypeStruct((Bp, Op), jnp.float32),
                   jax.ShapeDtypeStruct((Bp, T), jnp.float32)),
        grid_spec=pltpu.PrefetchScalarGridSpec(
            num_scalar_prefetch=0,
            grid=(Bp // TB,),
            in_specs=in_specs,
            out_specs=out_specs,
        ),
        compiler_params=pltpu.CompilerParams(
            dimension_semantics=("parallel",),
            vmem_limit_bytes=vmem_limit,
        ),
    )(state_p, enc_p, *weight_args)

    context = ctx[:B, :O]
    attention_probs = probs[:B, :, None]   # (B, T, 1), matching the PyTorch module
    return context, attention_probs


def _init_linear(key, in_dim, out_dim):
    # Emulate PyTorch nn.Linear init: uniform(-1/sqrt(in), 1/sqrt(in)), W (out,in).
    kw, kb = jax.random.split(key)
    bound = 1.0 / (in_dim ** 0.5)
    w = jax.random.uniform(kw, (out_dim, in_dim), jnp.float32, -bound, bound)
    b = jax.random.uniform(kb, (out_dim,), jnp.float32, -bound, bound)
    # Kernel uses (in, out) weights and (1, out) biases: y = x @ W + b
    return w.T, b[None, :]


def make_params(key, state_size, encoded_size, hidden_size, out_size):
    keys = jax.random.split(key, 6)
    pw1, pb1 = _init_linear(keys[0], state_size, hidden_size)
    pw2, pb2 = _init_linear(keys[1], hidden_size, hidden_size)
    pw3, pb3 = _init_linear(keys[2], hidden_size, out_size)
    sw1, sb1 = _init_linear(keys[3], encoded_size, hidden_size)
    sw2, sb2 = _init_linear(keys[4], hidden_size, hidden_size)
    sw3, sb3 = _init_linear(keys[5], hidden_size, out_size)
    return dict(pw1=pw1, pb1=pb1, pw2=pw2, pb2=pb2, pw3=pw3, pb3=pb3,
                sw1=sw1, sb1=sb1, sw2=sw2, sb2=sb2, sw3=sw3, sb3=sb3)


def attend_ref(state, encoded, p):
    # Pure-JAX f32 reference (the PyTorch Attend.forward semantics).
    def mlp(x, w1, b1, w2, b2, w3, b3):
        x = jnp.maximum(x @ w1 + b1, 0.0)
        x = jnp.maximum(x @ w2 + b2, 0.0)
        return x @ w3 + b3
    query = mlp(state, p["pw1"], p["pb1"], p["pw2"], p["pb2"], p["pw3"], p["pb3"])[:, None, :]
    support = mlp(encoded, p["sw1"], p["sb1"], p["sw2"], p["sb2"], p["sw3"], p["sb3"])
    scores = jnp.einsum("bto,bqo->btq", support, query)            # (B, T, 1)
    probs = jax.nn.softmax(scores, axis=1)
    context = jnp.sum(support * probs, axis=1)
    return context, probs


if __name__ == "__main__":
    # Shapes consistent with Spell(hidden_size=32, context_size=64):
    #   Attend(state_size=32, encoded_size=64, hidden_size=96, out_size=64)
    B, T = 16, 16
    hidden = 32
    state_size, encoded_size = hidden, 2 * hidden
    attn_hidden, out_size = 3 * hidden, 64

    key = jax.random.PRNGKey(0)
    k_state, k_enc, k_params = jax.random.split(key, 3)
    state = jax.random.normal(k_state, (B, state_size), jnp.float32)
    encoded = jax.random.normal(k_enc, (B, T, encoded_size), jnp.float32)
    params = make_params(k_params, state_size, encoded_size, attn_hidden, out_size)

    ctx, probs = attend(state, encoded, params, block_b=8)
    jax.block_until_ready((ctx, probs))

    ctx_ref, probs_ref = attend_ref(state, encoded, params)
    assert ctx.shape == (B, out_size) and probs.shape == (B, T, 1)
    # bf16 matmuls + approx reciprocal -> loosened tolerances vs the f32 reference.
    assert jnp.allclose(ctx, ctx_ref, atol=3e-2, rtol=3e-2)
    assert jnp.allclose(probs, probs_ref, atol=2e-2, rtol=2e-2)
    assert float(jnp.max(jnp.abs(jnp.sum(probs, axis=1) - 1.0))) < 1e-2

    print("KERNEL_OK")
</pallas_src>

<mosaic_0001>
module attributes {stable_mosaic.version = 11 : i64} {
  func.func @_attend_kernel(%arg0: i32, %arg1: memref<8x32xbf16, #tpu.memory_space<vmem>>, %arg2: memref<8x16x64xbf16, #tpu.memory_space<vmem>>, %arg3: memref<32x128xbf16, #tpu.memory_space<vmem>>, %arg4: memref<1x128xf32, #tpu.memory_space<vmem>>, %arg5: memref<128x128xbf16, #tpu.memory_space<vmem>>, %arg6: memref<1x128xf32, #tpu.memory_space<vmem>>, %arg7: memref<128x128xbf16, #tpu.memory_space<vmem>>, %arg8: memref<1x128xf32, #tpu.memory_space<vmem>>, %arg9: memref<64x128xbf16, #tpu.memory_space<vmem>>, %arg10: memref<1x128xf32, #tpu.memory_space<vmem>>, %arg11: memref<128x128xbf16, #tpu.memory_space<vmem>>, %arg12: memref<1x128xf32, #tpu.memory_space<vmem>>, %arg13: memref<128x128xbf16, #tpu.memory_space<vmem>>, %arg14: memref<1x128xf32, #tpu.memory_space<vmem>>, %arg15: memref<8x128xf32, #tpu.memory_space<vmem>>, %arg16: memref<8x16xf32, #tpu.memory_space<vmem>>) attributes {dimension_semantics = [#tpu.dimension_semantics<parallel>], iteration_bounds = array<i64: 2>, scalar_prefetch = 0 : i64, scratch_operands = 0 : i64, tpu.core_type = #tpu.core_type<tc>, window_params = [{transform_indices = @transform_0, window_bounds = array<i64: 8, 32>}, {transform_indices = @transform_1, window_bounds = array<i64: 8, 16, 64>}, {pipeline_mode = #tpu.pipeline_mode<synchronous>, transform_indices = @transform_2, window_bounds = array<i64: 32, 128>}, {pipeline_mode = #tpu.pipeline_mode<synchronous>, transform_indices = @transform_3, window_bounds = array<i64: 1, 128>}, {pipeline_mode = #tpu.pipeline_mode<synchronous>, transform_indices = @transform_4, window_bounds = array<i64: 128, 128>}, {pipeline_mode = #tpu.pipeline_mode<synchronous>, transform_indices = @transform_5, window_bounds = array<i64: 1, 128>}, {pipeline_mode = #tpu.pipeline_mode<synchronous>, transform_indices = @transform_6, window_bounds = array<i64: 128, 128>}, {pipeline_mode = #tpu.pipeline_mode<synchronous>, transform_indices = @transform_7, window_bounds = array<i64: 1, 128>}, {pipeline_mode = #tpu.pipeline_mode<synchronous>, transform_indices = @transform_8, window_bounds = array<i64: 64, 128>}, {pipeline_mode = #tpu.pipeline_mode<synchronous>, transform_indices = @transform_9, window_bounds = array<i64: 1, 128>}, {pipeline_mode = #tpu.pipeline_mode<synchronous>, transform_indices = @transform_10, window_bounds = array<i64: 128, 128>}, {pipeline_mode = #tpu.pipeline_mode<synchronous>, transform_indices = @transform_11, window_bounds = array<i64: 1, 128>}, {pipeline_mode = #tpu.pipeline_mode<synchronous>, transform_indices = @transform_12, window_bounds = array<i64: 128, 128>}, {pipeline_mode = #tpu.pipeline_mode<synchronous>, transform_indices = @transform_13, window_bounds = array<i64: 1, 128>}, {transform_indices = @transform_14, window_bounds = array<i64: 8, 128>}, {transform_indices = @transform_15, window_bounds = array<i64: 8, 16>}]} {
    %c0 = arith.constant 0 : index
    %c0_0 = arith.constant 0 : index
    %0 = vector.load %arg1[%c0, %c0_0] : memref<8x32xbf16, #tpu.memory_space<vmem>>, vector<8x32xbf16>
    %c0_1 = arith.constant 0 : index
    %c0_2 = arith.constant 0 : index
    %1 = vector.load %arg3[%c0_1, %c0_2] : memref<32x128xbf16, #tpu.memory_space<vmem>>, vector<32x128xbf16>
    %cst = arith.constant dense<0.000000e+00> : vector<8x128xf32>
    %2 = tpu.matmul %0, %1, %cst {dimension_numbers = #tpu.dot_dimension_numbers<[1], [0], [0], [1], [0, 0, 1, 1], [], []>} : vector<8x32xbf16>, vector<32x128xbf16>, vector<8x128xf32> -> vector<8x128xf32>
    %c0_3 = arith.constant 0 : index
    %c0_4 = arith.constant 0 : index
    %3 = vector.load %arg4[%c0_3, %c0_4] : memref<1x128xf32, #tpu.memory_space<vmem>>, vector<1x128xf32>
    %4 = vector.broadcast %3 : vector<1x128xf32> to vector<8x128xf32>
    %5 = arith.addf %2, %4 : vector<8x128xf32>
    %cst_5 = arith.constant 0.000000e+00 : f32
    %6 = vector.broadcast %cst_5 : f32 to vector<8x128xf32>
    %7 = arith.maximumf %5, %6 : vector<8x128xf32>
    %8 = arith.truncf %7 : vector<8x128xf32> to vector<8x128xbf16>
    %c0_6 = arith.constant 0 : index
    %c0_7 = arith.constant 0 : index
    %9 = vector.load %arg5[%c0_6, %c0_7] : memref<128x128xbf16, #tpu.memory_space<vmem>>, vector<128x128xbf16>
    %cst_8 = arith.constant dense<0.000000e+00> : vector<8x128xf32>
    %10 = tpu.matmul %8, %9, %cst_8 {dimension_numbers = #tpu.dot_dimension_numbers<[1], [0], [0], [1], [0, 0, 1, 1], [], []>} : vector<8x128xbf16>, vector<128x128xbf16>, vector<8x128xf32> -> vector<8x128xf32>
    %c0_9 = arith.constant 0 : index
    %c0_10 = arith.constant 0 : index
    %11 = vector.load %arg6[%c0_9, %c0_10] : memref<1x128xf32, #tpu.memory_space<vmem>>, vector<1x128xf32>
    %12 = vector.broadcast %11 : vector<1x128xf32> to vector<8x128xf32>
    %13 = arith.addf %10, %12 : vector<8x128xf32>
    %cst_11 = arith.constant 0.000000e+00 : f32
    %14 = vector.broadcast %cst_11 : f32 to vector<8x128xf32>
    %15 = arith.maximumf %13, %14 : vector<8x128xf32>
    %16 = arith.truncf %15 : vector<8x128xf32> to vector<8x128xbf16>
    %c0_12 = arith.constant 0 : index
    %c0_13 = arith.constant 0 : index
    %17 = vector.load %arg7[%c0_12, %c0_13] : memref<128x128xbf16, #tpu.memory_space<vmem>>, vector<128x128xbf16>
    %cst_14 = arith.constant dense<0.000000e+00> : vector<8x128xf32>
    %18 = tpu.matmul %16, %17, %cst_14 {dimension_numbers = #tpu.dot_dimension_numbers<[1], [0], [0], [1], [0, 0, 1, 1], [], []>} : vector<8x128xbf16>, vector<128x128xbf16>, vector<8x128xf32> -> vector<8x128xf32>
    %c0_15 = arith.constant 0 : index
    %c0_16 = arith.constant 0 : index
    %19 = vector.load %arg8[%c0_15, %c0_16] : memref<1x128xf32, #tpu.memory_space<vmem>>, vector<1x128xf32>
    %20 = vector.broadcast %19 : vector<1x128xf32> to vector<8x128xf32>
    %21 = arith.addf %18, %20 : vector<8x128xf32>
    %c0_17 = arith.constant 0 : index
    %c0_18 = arith.constant 0 : index
    %c0_19 = arith.constant 0 : index
    %22 = vector.load %arg2[%c0_17, %c0_18, %c0_19] : memref<8x16x64xbf16, #tpu.memory_space<vmem>>, vector<8x16x64xbf16>
    %23 = vector.shape_cast %22 : vector<8x16x64xbf16> to vector<128x64xbf16>
    %c0_20 = arith.constant 0 : index
    %c0_21 = arith.constant 0 : index
    %24 = vector.load %arg9[%c0_20, %c0_21] : memref<64x128xbf16, #tpu.memory_space<vmem>>, vector<64x128xbf16>
    %cst_22 = arith.constant dense<0.000000e+00> : vector<128x128xf32>
    %25 = tpu.matmul %23, %24, %cst_22 {dimension_numbers = #tpu.dot_dimension_numbers<[1], [0], [0], [1], [0, 0, 1, 1], [], []>} : vector<128x64xbf16>, vector<64x128xbf16>, vector<128x128xf32> -> vector<128x128xf32>
    %c0_23 = arith.constant 0 : index
    %c0_24 = arith.constant 0 : index
    %26 = vector.load %arg10[%c0_23, %c0_24] : memref<1x128xf32, #tpu.memory_space<vmem>>, vector<1x128xf32>
    %27 = vector.broadcast %26 : vector<1x128xf32> to vector<128x128xf32>
    %28 = arith.addf %25, %27 : vector<128x128xf32>
    %cst_25 = arith.constant 0.000000e+00 : f32
    %29 = vector.broadcast %cst_25 : f32 to vector<128x128xf32>
    %30 = arith.maximumf %28, %29 : vector<128x128xf32>
    %31 = arith.truncf %30 : vector<128x128xf32> to vector<128x128xbf16>
    %c0_26 = arith.constant 0 : index
    %c0_27 = arith.constant 0 : index
    %32 = vector.load %arg11[%c0_26, %c0_27] : memref<128x128xbf16, #tpu.memory_space<vmem>>, vector<128x128xbf16>
    %cst_28 = arith.constant dense<0.000000e+00> : vector<128x128xf32>
    %33 = tpu.matmul %31, %32, %cst_28 {dimension_numbers = #tpu.dot_dimension_numbers<[1], [0], [0], [1], [0, 0, 1, 1], [], []>} : vector<128x128xbf16>, vector<128x128xbf16>, vector<128x128xf32> -> vector<128x128xf32>
    %c0_29 = arith.constant 0 : index
    %c0_30 = arith.constant 0 : index
    %34 = vector.load %arg12[%c0_29, %c0_30] : memref<1x128xf32, #tpu.memory_space<vmem>>, vector<1x128xf32>
    %35 = vector.broadcast %34 : vector<1x128xf32> to vector<128x128xf32>
    %36 = arith.addf %33, %35 : vector<128x128xf32>
    %cst_31 = arith.constant 0.000000e+00 : f32
    %37 = vector.broadcast %cst_31 : f32 to vector<128x128xf32>
    %38 = arith.maximumf %36, %37 : vector<128x128xf32>
    %39 = arith.truncf %38 : vector<128x128xf32> to vector<128x128xbf16>
    %c0_32 = arith.constant 0 : index
    %c0_33 = arith.constant 0 : index
    %40 = vector.load %arg13[%c0_32, %c0_33] : memref<128x128xbf16, #tpu.memory_space<vmem>>, vector<128x128xbf16>
    %cst_34 = arith.constant dense<0.000000e+00> : vector<128x128xf32>
    %41 = tpu.matmul %39, %40, %cst_34 {dimension_numbers = #tpu.dot_dimension_numbers<[1], [0], [0], [1], [0, 0, 1, 1], [], []>} : vector<128x128xbf16>, vector<128x128xbf16>, vector<128x128xf32> -> vector<128x128xf32>
    %c0_35 = arith.constant 0 : index
    %c0_36 = arith.constant 0 : index
    %42 = vector.load %arg14[%c0_35, %c0_36] : memref<1x128xf32, #tpu.memory_space<vmem>>, vector<1x128xf32>
    %43 = vector.broadcast %42 : vector<1x128xf32> to vector<128x128xf32>
    %44 = arith.addf %41, %43 : vector<128x128xf32>
    %45 = vector.shape_cast %44 : vector<128x128xf32> to vector<8x16x128xf32>
    %46 = vector.shape_cast %21 : vector<8x128xf32> to vector<8x1x128xf32>
    %47 = vector.broadcast %46 : vector<8x1x128xf32> to vector<8x16x128xf32>
    %48 = arith.mulf %45, %47 : vector<8x16x128xf32>
    %cst_37 = arith.constant dense<0.000000e+00> : vector<8x16xf32>
    %49 = vector.multi_reduction <add>, %48, %cst_37 [2] : vector<8x16x128xf32> to vector<8x16xf32>
    %cst_38 = arith.constant dense<0xFF800000> : vector<8xf32>
    %50 = vector.multi_reduction <maximumf>, %49, %cst_38 [1] : vector<8x16xf32> to vector<8xf32>
    %51 = vector.shape_cast %50 : vector<8xf32> to vector<8x1xf32>
    %52 = vector.broadcast %51 : vector<8x1xf32> to vector<8x16xf32>
    %53 = arith.subf %49, %52 : vector<8x16xf32>
    %54 = math.exp %53 : vector<8x16xf32>
    %cst_39 = arith.constant dense<0.000000e+00> : vector<8xf32>
    %55 = vector.multi_reduction <add>, %54, %cst_39 [1] : vector<8x16xf32> to vector<8xf32>
    %56 = vector.shape_cast %55 : vector<8xf32> to vector<8x1xf32>
    %57 = tpu.reciprocal %56 {approx = true} : vector<8x1xf32> -> vector<8x1xf32>
    %58 = vector.broadcast %57 : vector<8x1xf32> to vector<8x16xf32>
    %59 = arith.mulf %54, %58 : vector<8x16xf32>
    %60 = vector.shape_cast %59 : vector<8x16xf32> to vector<8x1x16xf32>
    "tpu.trace_start"() <{level = 10 : i32, message = "bqt,bto->bqo"}> : () -> ()
    %cst_40 = arith.constant dense<0.000000e+00> : vector<8x1x128xf32>
    %61 = tpu.matmul %60, %45, %cst_40 {dimension_numbers = #tpu.dot_dimension_numbers<[2], [1], [1], [2], [0, 0, 0, 1, 1, 2], [0], [0]>} : vector<8x1x16xf32>, vector<8x16x128xf32>, vector<8x1x128xf32> -> vector<8x1x128xf32>
    "tpu.trace_stop"() : () -> ()
    %62 = vector.shape_cast %61 : vector<8x1x128xf32> to vector<8x128xf32>
    %c0_41 = arith.constant 0 : index
    %c0_42 = arith.constant 0 : index
    %63 = vector.load %arg15[%c0_41, %c0_42] : memref<8x128xf32, #tpu.memory_space<vmem>>, vector<8x128xf32>
    tpu.vector_store %arg15[%c0_41, %c0_42], %62 {strides = array<i32>} : memref<8x128xf32, #tpu.memory_space<vmem>>, vector<8x128xf32>,
    %c0_43 = arith.constant 0 : index
    %c0_44 = arith.constant 0 : index
    %64 = vector.load %arg16[%c0_43, %c0_44] : memref<8x16xf32, #tpu.memory_space<vmem>>, vector<8x16xf32>
    tpu.vector_store %arg16[%c0_43, %c0_44], %59 {strides = array<i32>} : memref<8x16xf32, #tpu.memory_space<vmem>>, vector<8x16xf32>,
    return
  }
  func.func @transform_0(%arg0: i32) -> (i32, i32) {
    %c0_i32 = arith.constant 0 : i32
    %c0_i32_0 = arith.constant 0 : i32
    return %arg0, %c0_i32 : i32, i32
  }
  func.func @transform_1(%arg0: i32) -> (i32, i32, i32) {
    %c0_i32 = arith.constant 0 : i32
    %c0_i32_0 = arith.constant 0 : i32
    %c0_i32_1 = arith.constant 0 : i32
    return %arg0, %c0_i32, %c0_i32_0 : i32, i32, i32
  }
  func.func @transform_2(%arg0: i32) -> (i32, i32) {
    %c0_i32 = arith.constant 0 : i32
    %c0_i32_0 = arith.constant 0 : i32
    %c0_i32_1 = arith.constant 0 : i32
    return %c0_i32, %c0_i32_0 : i32, i32
  }
  func.func @transform_3(%arg0: i32) -> (i32, i32) {
    %c0_i32 = arith.constant 0 : i32
    %c0_i32_0 = arith.constant 0 : i32
    %c0_i32_1 = arith.constant 0 : i32
    return %c0_i32, %c0_i32_0 : i32, i32
  }
  func.func @transform_4(%arg0: i32) -> (i32, i32) {
    %c0_i32 = arith.constant 0 : i32
    %c0_i32_0 = arith.constant 0 : i32
    %c0_i32_1 = arith.constant 0 : i32
    return %c0_i32, %c0_i32_0 : i32, i32
  }
  func.func @transform_5(%arg0: i32) -> (i32, i32) {
    %c0_i32 = arith.constant 0 : i32
    %c0_i32_0 = arith.constant 0 : i32
    %c0_i32_1 = arith.constant 0 : i32
    return %c0_i32, %c0_i32_0 : i32, i32
  }
  func.func @transform_6(%arg0: i32) -> (i32, i32) {
    %c0_i32 = arith.constant 0 : i32
    %c0_i32_0 = arith.constant 0 : i32
    %c0_i32_1 = arith.constant 0 : i32
    return %c0_i32, %c0_i32_0 : i32, i32
  }
  func.func @transform_7(%arg0: i32) -> (i32, i32) {
    %c0_i32 = arith.constant 0 : i32
    %c0_i32_0 = arith.constant 0 : i32
    %c0_i32_1 = arith.constant 0 : i32
    return %c0_i32, %c0_i32_0 : i32, i32
  }
  func.func @transform_8(%arg0: i32) -> (i32, i32) {
    %c0_i32 = arith.constant 0 : i32
    %c0_i32_0 = arith.constant 0 : i32
    %c0_i32_1 = arith.constant 0 : i32
    return %c0_i32, %c0_i32_0 : i32, i32
  }
  func.func @transform_9(%arg0: i32) -> (i32, i32) {
    %c0_i32 = arith.constant 0 : i32
    %c0_i32_0 = arith.constant 0 : i32
    %c0_i32_1 = arith.constant 0 : i32
    return %c0_i32, %c0_i32_0 : i32, i32
  }
  func.func @transform_10(%arg0: i32) -> (i32, i32) {
    %c0_i32 = arith.constant 0 : i32
    %c0_i32_0 = arith.constant 0 : i32
    %c0_i32_1 = arith.constant 0 : i32
    return %c0_i32, %c0_i32_0 : i32, i32
  }
  func.func @transform_11(%arg0: i32) -> (i32, i32) {
    %c0_i32 = arith.constant 0 : i32
    %c0_i32_0 = arith.constant 0 : i32
    %c0_i32_1 = arith.constant 0 : i32
    return %c0_i32, %c0_i32_0 : i32, i32
  }
  func.func @transform_12(%arg0: i32) -> (i32, i32) {
    %c0_i32 = arith.constant 0 : i32
    %c0_i32_0 = arith.constant 0 : i32
    %c0_i32_1 = arith.constant 0 : i32
    return %c0_i32, %c0_i32_0 : i32, i32
  }
  func.func @transform_13(%arg0: i32) -> (i32, i32) {
    %c0_i32 = arith.constant 0 : i32
    %c0_i32_0 = arith.constant 0 : i32
    %c0_i32_1 = arith.constant 0 : i32
    return %c0_i32, %c0_i32_0 : i32, i32
  }
  func.func @transform_14(%arg0: i32) -> (i32, i32) {
    %c0_i32 = arith.constant 0 : i32
    %c0_i32_0 = arith.constant 0 : i32
    return %arg0, %c0_i32 : i32, i32
  }
  func.func @transform_15(%arg0: i32) -> (i32, i32) {
    %c0_i32 = arith.constant 0 : i32
    %c0_i32_0 = arith.constant 0 : i32
    return %arg0, %c0_i32 : i32, i32
  }
}

</mosaic_0001>

<bundles_post_ra>
// kernel: tpu_custom_call.1
= control target key start
LH: loop header
LB: loop body
LE: loop exit
PB: predicated region body
PF: predicated region fallthrough
CT: control target
= control target key end

     0   :  { %s5032_s0 = inlined_call_operand.hbm [shape: bf16[16,32], index: 0, kind: input, shape index: {}]   ;;  %s5033_s1 = inlined_call_operand.hbm [shape: bf16[16,16,64], index: 1, kind: input, shape index: {}]   ;;  %s5034_s2 = inlined_call_operand.hbm [shape: bf16[32,128], index: 2, kind: input, shape index: {}]   ;;  %s5035_s3 = inlined_call_operand.vmem [shape: f32[1,128], index: 3, kind: input, shape index: {}]   ;;  %s5036_s4 = inlined_call_operand.hbm [shape: bf16[128,128], index: 4, kind: input, shape index: {}]   ;;  %s5037_s5 = inlined_call_operand.vmem [shape: f32[1,128], index: 5, kind: input, shape index: {}]   ;;  %s5038_s6 = inlined_call_operand.hbm [shape: bf16[128,128], index: 6, kind: input, shape index: {}]   ;;  %s5039_s7 = inlined_call_operand.vmem [shape: f32[1,128], index: 7, kind: input, shape index: {}]   ;;  %s5040_s8 = inlined_call_operand.hbm [shape: bf16[64,128], index: 8, kind: input, shape index: {}]   ;;  %s5041_s9 = inlined_call_operand.vmem [shape: f32[1,128], index: 9, kind: input, shape index: {}]   ;;  %s5042_s10 = inlined_call_operand.hbm [shape: bf16[128,128], index: 10, kind: input, shape index: {}]   ;;  %s5043_s11 = inlined_call_operand.vmem [shape: f32[1,128], index: 11, kind: input, shape index: {}]   ;;  %s5044_s12 = inlined_call_operand.hbm [shape: bf16[128,128], index: 12, kind: input, shape index: {}]   ;;  %s5045_s13 = inlined_call_operand.vmem [shape: f32[1,128], index: 13, kind: input, shape index: {}]   ;;  %s5046_s14 = inlined_call_operand.hbm [shape: f32[16,128], index: 14, kind: output, shape index: {0}]   ;;  %s5047_s15 = inlined_call_operand.hbm [shape: f32[16,16], index: 15, kind: output, shape index: {1}]  }
   0x1   :  { %5059 = sst [smem:[#allocation27_spill]] %s5032_s0 }
   0x2   :  { %5060 = sst [smem:[#allocation28_spill]] %s5034_s2 }
   0x3   :  { %5061 = sst [smem:[#allocation29_spill]] %s5036_s4 }
   0x4   :  { %5062 = sst [smem:[#allocation30_spill]] %s5037_s5 }
   0x5   :  { %5063 = sst [smem:[#allocation31_spill]] %s5038_s6 }
   0x6   :  { %5064 = sst [smem:[#allocation32_spill]] %s5039_s7 }
   0x7   :  { %5065 = sst [smem:[#allocation33_spill]] %s5041_s9 }
   0x8   :  { %5066 = sst [smem:[#allocation34_spill]] %s5043_s11 }
   0x9   :  { %5067 = sst [smem:[#allocation35_spill]] %s5045_s13 }
   0xa   :  { %5068 = sst [smem:[#allocation36_spill]] %s5046_s14 }
   0xb   :  { %5069 = sst [smem:[#allocation37_spill]] %s5047_s15 }
   0xc   :  { %21 = vsyncpa [#allocation3], 0 }
   0xd   :  { %23 = vsyncpa [#allocation3 + $0x1], 0 }
   0xe   :  { %24 = vsyncpa [#allocation6], 0 }
   0xf   :  { %26 = vsyncpa [#allocation6 + $0x1], 0 }
  0x10   :  { %27 = vsyncpa [#allocation9], 0 }
  0x11   :  { %28 = vsyncpa [#allocation12], 0 }
  0x12   :  { %29 = vsyncpa [#allocation15], 0 }
  0x13   :  { %30 = vsyncpa [#allocation4], 0 }
  0x14   :  { %32 = vsyncpa [#allocation4 + $0x1], 0 }
  0x15   :  { %33 = vsyncpa [#allocation18], 0 }
  0x16   :  { %35 = vsyncpa [#allocation18 + $0x1], 0  ;;  %s4107_s18 = smov 0   ;;  %s4109_s19 = smov 0  }
  0x17   :  { %s4111_s20 = smov 0   ;;  %s4113_s21 = smov 0  }
  0x18 LB: > { %s4010_s22 = smov [#allocation7]   ;;  %s4128_s24 = sadd.s32 4294967295, %s4008_s21   ;;  %s4008_s21 = sphi %s4113_s21, %s5115_s21   ;;  %s4004_s20 = sphi %s4111_s20, %s5114_s20   ;;  %s4000_s19 = sphi %s4109_s19, %s5113_s19   ;;  %s3996_s18 = sphi %s4107_s18, %s5112_s18  }
  0x19   : > { %s414_s23 = sshll.u32 %s4010_s22, 4  ;;  %p3049_p0 = scmp.ge.s32.totalorder %s4008_s21, 1  ;;  %s4133_s23 = int_to_ptr.vmem [resolvable:$true] %s414_s23 }
  0x1a   : > { %p5050_p1 = scmp.eq.s32.totalorder %s4128_s24, 0  ;;  %p402_p2 = scmp.lt.s32.totalorder %s4008_s21, 3 }
  0x1b   : > { %s4011_s26 = smov [#allocation8]   ;;  %s4012_s29 = smov [#allocation11]  }
  0x1c   : > { %p4135_p3 = pnand %p3049_p0, %p402_p2  ;;  %s430_s27 = sshll.u32 %s4011_s26, 4  ;;  %s4148_s27 = int_to_ptr.vmem [resolvable:$true] %s430_s27 }
  0x1d   : > { %s462_s30 = sshll.u32 %s4012_s29, 4  ;;  %s5072_s2 = sld [smem:[#allocation28_spill]]  ;;  %s4150_s30 = int_to_ptr.vmem [resolvable:$true] %s462_s30 }
  0x1e   : > { %s5070_s25 = scalar_select %p4135_p3, 1, 0 }
  0x1f   : > { %p3488_p5 = pneg %p4135_p3 }
  0x21   : > { %p4144_p6 = pnand %p3488_p5, %p5050_p1 }
  0x23   : > { %s3662_s22 = scalar_lea.hbm %s5072_s2, 256  ;;  %p4160_p8 = pneg %p4144_p6 }
  0x24   : > { %p3663_p7 = scmp.ne.s32.totalorder %s5072_s2, %s3662_s22  ;;  %p3669_p11 = scmp.lt.u32.totalorder %s3662_s22, %s5072_s2 }
  0x26   : > { %p3665_p9 = pnand %p4160_p8, %p3663_p7 }
  0x28   : > { %p3666_p10 = pneg %p3665_p9 }
  0x2a   : > { %p3671_p12 = pnand %p3669_p11, %p3666_p10 }
  0x2c   : > { %3674 = shalt.err (!%p3671_p12)
}
  0x2d   : > { %s3675_s14 = scalar_lea.vmem %s4133_s23, 256  ;;  %p3683_p5 = scmp.lt.s32.totalorder %s4133_s23, %s4133_s23 }
  0x2e   : > { %p3676_p13 = scmp.ne.s32.totalorder %s4133_s23, %s3675_s14  ;;  %p3684_p4 = scmp.lt.s32.totalorder %s3675_s14, %s3675_s14 }
  0x30   : > { %p3678_p0 = pnand %p3676_p13, %p4160_p8  ;;  %p3685_p7 = por %p3684_p4, %p3683_p5 }
  0x32   : > { %p3679_p2 = pneg %p3678_p0 }
  0x34   : > { %p3686_p9 = pnand %p3685_p7, %p3679_p2 }
  0x36   : > { %3689 = shalt.err (!%p3686_p9)
}
  0x37   : > { %s5052_s15 = smov 64   ;;  %s5053_s13 = smov 4  }
  0x38   : > { %3491 = dma.hbm_to_vmem [thread:$0]  (!%p4144_p6), %s5072_s2, 256, %s4133_s23, [#allocation6], %s5052_s15, %s5052_s15, %s5053_s13  }
  0x39   : > { %s5074_s4 = sld [smem:[#allocation29_spill]] }
  0x3f   : > { %s3690_s14 = scalar_lea.hbm %s5074_s4, 1024 }
  0x40   : > { %p3691_p4 = scmp.ne.s32.totalorder %s5074_s4, %s3690_s14  ;;  %p3697_p12 = scmp.lt.u32.totalorder %s3690_s14, %s5074_s4 }
  0x42   : > { %p3693_p10 = pnand %p3691_p4, %p4160_p8 }
  0x44   : > { %p3694_p11 = pneg %p3693_p10 }
  0x46   : > { %p3699_p13 = pnand %p3697_p12, %p3694_p11 }
  0x48   : > { %3702 = shalt.err (!%p3699_p13)
}
  0x49   : > { %s3703_s23 = scalar_lea.vmem %s4148_s27, 1024  ;;  %p3711_p7 = scmp.lt.s32.totalorder %s4148_s27, %s4148_s27 }
  0x4a   : > { %p3704_p0 = scmp.ne.s32.totalorder %s4148_s27, %s3703_s23  ;;  %p3712_p9 = scmp.lt.s32.totalorder %s3703_s23, %s3703_s23 }
  0x4c   : > { %p3706_p2 = pnand %p3704_p0, %p4160_p8  ;;  %p3713_p4 = por %p3712_p9, %p3711_p7 }
  0x4e   : > { %p3707_p5 = pneg %p3706_p2 }
  0x50   : > { %p3714_p10 = pnand %p3713_p4, %p3707_p5 }
  0x52   : > { %3717 = shalt.err (!%p3714_p10)
}
  0x53   : > { %3494 = dma.hbm_to_vmem [thread:$0]  (!%p4144_p6), %s5074_s4, 1024, %s4148_s27, [#allocation9], %s5052_s15, %s5052_s15, %s5053_s13  }
  0x54   : > { %s3718_s16 = scalar_lea.hbm %s5040_s8, 512 }
  0x55   : > { %p3719_p11 = scmp.ne.s32.totalorder %s5040_s8, %s3718_s16  ;;  %p3725_p0 = scmp.lt.u32.totalorder %s3718_s16, %s5040_s8 }
  0x57   : > { %p3721_p12 = pnand %p3719_p11, %p4160_p8 }
  0x59   : > { %p3722_p13 = pneg %p3721_p12 }
  0x5b   : > { %p3727_p2 = pnand %p3725_p0, %p3722_p13 }
  0x5d   : > { %3730 = shalt.err (!%p3727_p2)
}
  0x5e   : > { %s3731_s27 = scalar_lea.vmem %s4150_s30, 512  ;;  %p3739_p4 = scmp.lt.s32.totalorder %s4150_s30, %s4150_s30 }
  0x5f   : > { %p3732_p5 = scmp.ne.s32.totalorder %s4150_s30, %s3731_s27  ;;  %p3740_p10 = scmp.lt.s32.totalorder %s3731_s27, %s3731_s27 }
  0x61   : > { %p3734_p7 = pnand %p3732_p5, %p4160_p8  ;;  %p3741_p11 = por %p3740_p10, %p3739_p4 }
  0x63   : > { %p3735_p9 = pneg %p3734_p7 }
  0x65   : > { %p3742_p12 = pnand %p3741_p11, %p3735_p9 }
  0x67   : > { %3745 = shalt.err (!%p3742_p12)
}
  0x68   : > { %3500 = dma.hbm_to_vmem [thread:$0]  (!%p4144_p6), %s5040_s8, 512, %s4150_s30, [#allocation12], %s5052_s15, %s5052_s15, %s5053_s13  }
  0x69   : > { %s4015_s7 = smov [#allocation10]   ;;  %s4016_s11 = smov [#allocation13]  }
  0x6a   : > { %s446_s9 = sshll.u32 %s4015_s7, 4  ;;  %s478_s16 = sshll.u32 %s4016_s11, 4  ;;  %s447_s9 = int_to_ptr.vmem [resolvable:$true] %s446_s9  ;;  %s479_s16 = int_to_ptr.vmem [resolvable:$true] %s478_s16 }
  0x6b   : > { %s5075_s6 = sld [smem:[#allocation31_spill]] }
  0x71   : > { %s3746_s29 = scalar_lea.hbm %s5075_s6, 1024 }
  0x72   : > { %p3747_p13 = scmp.ne.s32.totalorder %s5075_s6, %s3746_s29  ;;  %p3753_p5 = scmp.lt.u32.totalorder %s3746_s29, %s5075_s6 }
  0x74   : > { %p3749_p0 = pnand %p3747_p13, %p4160_p8 }
  0x76   : > { %p3750_p2 = pneg %p3749_p0 }
  0x78   : > { %p3755_p7 = pnand %p3753_p5, %p3750_p2 }
  0x7a   : > { %3758 = shalt.err (!%p3755_p7)
}
  0x7b   : > { %s3759_s30 = scalar_lea.vmem %s447_s9, 1024  ;;  %p3767_p11 = scmp.lt.s32.totalorder %s447_s9, %s447_s9 }
  0x7c   : > { %p3760_p9 = scmp.ne.s32.totalorder %s447_s9, %s3759_s30  ;;  %p3768_p12 = scmp.lt.s32.totalorder %s3759_s30, %s3759_s30 }
  0x7e   : > { %p3762_p4 = pnand %p3760_p9, %p4160_p8  ;;  %p3769_p1 = por %p3768_p12, %p3767_p11 }
  0x80   : > { %p3763_p10 = pneg %p3762_p4 }
  0x82   : > { %p3770_p3 = pnand %p3769_p1, %p3763_p10 }
  0x84   : > { %3773 = shalt.err (!%p3770_p3)
}
  0x85   : > { %3497 = dma.hbm_to_vmem [thread:$0]  (!%p4144_p6), %s5075_s6, 1024, %s447_s9, [#allocation9], %s5052_s15, %s5052_s15, %s5053_s13  }
  0x86   : > { %s3774_s17 = scalar_lea.hbm %s5042_s10, 1024 }
  0x87   : > { %p3775_p1 = scmp.ne.s32.totalorder %s5042_s10, %s3774_s17  ;;  %p3781_p0 = scmp.lt.u32.totalorder %s3774_s17, %s5042_s10 }
  0x89   : > { %p3777_p3 = pnand %p3775_p1, %p4160_p8 }
  0x8b   : > { %p3778_p13 = pneg %p3777_p3 }
  0x8d   : > { %p3783_p2 = pnand %p3781_p0, %p3778_p13 }
  0x8f   : > { %3786 = shalt.err (!%p3783_p2)
}
  0x90   : > { %s3787_s23 = scalar_lea.vmem %s479_s16, 1024  ;;  %p3795_p4 = scmp.lt.s32.totalorder %s479_s16, %s479_s16 }
  0x91   : > { %p3788_p5 = scmp.ne.s32.totalorder %s479_s16, %s3787_s23  ;;  %p3796_p10 = scmp.lt.s32.totalorder %s3787_s23, %s3787_s23 }
  0x93   : > { %p3790_p7 = pnand %p3788_p5, %p4160_p8  ;;  %p3797_p11 = por %p3796_p10, %p3795_p4 }
  0x95   : > { %p3791_p9 = pneg %p3790_p7 }
  0x97   : > { %p3798_p12 = pnand %p3797_p11, %p3791_p9 }
  0x99   : > { %3801 = shalt.err (!%p3798_p12)
}
  0x9a   : > { %3503 = dma.hbm_to_vmem [thread:$0]  (!%p4144_p6), %s5042_s10, 1024, %s479_s16, [#allocation12], %s5052_s15, %s5052_s15, %s5053_s13  }
  0x9b   : > { %s4017_s2 = smov [#allocation14]   ;;  %s3802_s17 = scalar_lea.hbm %s5044_s12, 1024 }
  0x9c   : > { %s494_s5 = sshll.u32 %s4017_s2, 4  ;;  %p3803_p1 = scmp.ne.s32.totalorder %s5044_s12, %s3802_s17  ;;  %s495_s5 = int_to_ptr.vmem [resolvable:$true] %s494_s5 }
  0x9d   : > { %p3809_p0 = scmp.lt.u32.totalorder %s3802_s17, %s5044_s12 }
  0x9e   : > { %p3805_p3 = pnand %p3803_p1, %p4160_p8 }
  0xa0   : > { %p3806_p13 = pneg %p3805_p3 }
  0xa2   : > { %p3811_p2 = pnand %p3809_p0, %p3806_p13 }
  0xa4   : > { %3814 = shalt.err (!%p3811_p2)
}
  0xa5   : > { %s3815_s16 = scalar_lea.vmem %s495_s5, 1024  ;;  %p3823_p4 = scmp.lt.s32.totalorder %s495_s5, %s495_s5 }
  0xa6   : > { %p3816_p5 = scmp.ne.s32.totalorder %s495_s5, %s3815_s16  ;;  %p3824_p10 = scmp.lt.s32.totalorder %s3815_s16, %s3815_s16 }
  0xa8   : > { %p3818_p7 = pnand %p3816_p5, %p4160_p8  ;;  %p3825_p11 = por %p3824_p10, %p3823_p4 }
  0xaa   : > { %p3819_p9 = pneg %p3818_p7 }
  0xac   : > { %p3826_p12 = pnand %p3825_p11, %p3819_p9 }
  0xae   : > { %3829 = shalt.err (!%p3826_p12)
}
  0xaf   : > { %3506 = dma.hbm_to_vmem [thread:$0]  (!%p4144_p6), %s5044_s12, 1024, %s495_s5, [#allocation15], %s5052_s15, %s5052_s15, %s5053_s13  }
  0xb0   : > { %s3048_s28 = sadd.s32 4294967294, %s4008_s21   ;;  %s4301_s26 = sadd.s32 1, %s4008_s21  }
  0xb1   : > { %s45_s30 = ssub.s32 %s4008_s21, %s4301_s26  ;;  %s48_s2 = sadd.s32 1, %s4004_s20 }
  0xb2   : > { %p46_p8 = scmp.eq.s32.totalorder %s45_s30, 0  ;;  %p55_p1 = scmp.ne.s32.totalorder %s4004_s20, %s4000_s19 }
  0xb3   : > { %p56_p3 = scmp.eq.s32.totalorder %s4008_s21, 0  ;;  %p61_p13 = scmp.ne.s32.totalorder %s4000_s19, %s3996_s18 }
  0xb4   : > { %s4312_s7 = scalar_select %p46_p8, %s4004_s20, %s48_s2  }
  0xb5   : > { %p4314_p0 = por %p56_p3, %p55_p1  ;;  %p5077_p2 = scmp.eq.s32.totalorder %s4128_s24, 0 }
  0xb6   : > { %p363_p5 = scmp.eq.s32.totalorder %s4128_s24, 1  ;;  %p369_p7 = scmp.eq.s32.totalorder %s3048_s28, 1 }
  0xb7   : > { %p4320_p6 = por %p5077_p2, %p61_p13  ;;  %p3527_p9 = scmp.lt.s32.totalorder %s4008_s21, 2 }
  0xb8   : > { %s4327_s17 = sand.u32 1, %s4004_s20   ;;  %p4329_p4 = por %p363_p5, %p55_p1 }
  0xb9   : > { %p4333_p10 = por %p369_p7, %p61_p13  ;;  %s3057_s14 = sshll.u32 %s4327_s17, 2 }
  0xba   : > { %s5079_s22 = scalar_select %p4329_p4, 1, 0 }
  0xbb   : > { %s5080_s29 = scalar_select %p4333_p10, 1, 0 }
  0xbc   : > { %s3058_s27 = sshll.u32 %s4008_s21, 6  ;;  %s5081_s0 = sld [smem:[#allocation27_spill]] }
  0xbd   : > { %s515_s28 = scalar_lea.vmem [#allocation2], %s3057_s14  ;;  %p4348_p11 = pnand %p3527_p9, %p4314_p0 }
  0xbe   : > { %s522_s30 = sshll.u32 %s515_s28, 4  ;;  %s3059_s15 = sshll.u32 %s4327_s17, 6  ;;  %s4344_s30 = int_to_ptr.vmem [resolvable:$true] %s522_s30 }
  0xbf   : > { %s512_s16 = scalar_lea.sflag [#allocation3], %s4327_s17  ;;  %p3832_p8 = pneg %p4348_p11 }
  0xc2   : > { %s4342_s9 = scalar_lea.hbm %s5081_s0, %s3058_s27  ;;  %s3835_s11 = scalar_lea.hbm %s5081_s0, 128 }
  0xc3   : > { %s3830_s27 = scalar_lea.hbm %s4342_s9, 64  ;;  %p3836_p13 = scmp.lt.u32.totalorder %s4342_s9, %s5081_s0 }
  0xc4   : > { %p3831_p12 = scmp.ne.s32.totalorder %s4342_s9, %s3830_s27  ;;  %p3837_p0 = scmp.lt.u32.totalorder %s3835_s11, %s3830_s27 }
  0xc5   : > { %p3839_p5 = scmp.lt.u32.totalorder %s3830_s27, %s4342_s9 }
  0xc6   : > { %p3833_p1 = pnand %p3832_p8, %p3831_p12  ;;  %p3838_p2 = por %p3837_p0, %p3836_p13 }
  0xc8   : > { %p3834_p3 = pneg %p3833_p1  ;;  %p3840_p7 = por %p3839_p5, %p3838_p2 }
  0xca   : > { %p3841_p9 = pnand %p3840_p7, %p3834_p3 }
  0xcc   : > { %3844 = shalt.err (!%p3841_p9)
}
  0xcd   : > { %s3845_s13 = scalar_lea.vmem %s4344_s30, 64  ;;  %s4018_s14 = smov [#allocation2]  }
  0xce   : > { %p3846_p12 = scmp.ne.s32.totalorder %s4344_s30, %s3845_s13  ;;  %s3850_s23 = sshll.u32 %s4018_s14, 4  ;;  %s3851_s23 = int_to_ptr.vmem [resolvable:$false] %s3850_s23 }
  0xcf   : > { %s3852_s4 = scalar_lea.vmem %s3851_s23, 128  ;;  %p3853_p4 = scmp.lt.s32.totalorder %s4344_s30, %s3851_s23 }
  0xd0   : > { %p3848_p1 = pnand %p3846_p12, %p3832_p8  ;;  %p3854_p13 = scmp.lt.s32.totalorder %s3852_s4, %s3845_s13 }
  0xd2   : > { %p3849_p10 = pneg %p3848_p1  ;;  %p3855_p0 = por %p3854_p13, %p3853_p4 }
  0xd4   : > { %p3856_p2 = pnand %p3855_p0, %p3849_p10 }
  0xd6   : > { %3859 = shalt.err (!%p3856_p2)
}
  0xd7   : > { %3510 = dma.hbm_to_vmem [thread:$0]  (!%p4348_p11), %s4342_s9, 64, %s4344_s30, %s512_s16  }
  0xd8   : > { %s533_s27 = scalar_lea.vmem [#allocation5], %s3059_s15  ;;  %s3150_s28 = sshll.u32 %s4008_s21, 10 }
  0xd9   : > { %s541_s11 = sshll.u32 %s533_s27, 4  ;;  %s4388_s23 = scalar_lea.hbm %s5033_s1, %s3150_s28  ;;  %s4382_s11 = int_to_ptr.vmem [resolvable:$true] %s541_s11 }
  0xda   : > { %s5083_s4 = sand.u32 1, %s4008_s21   ;;  %s3860_s6 = scalar_lea.hbm %s4388_s23, 1024 }
  0xdb   : > { %s4392_s0 = scalar_lea.sflag [#allocation6], %s5083_s4  ;;  %p3861_p4 = scmp.ne.s32.totalorder %s4388_s23, %s3860_s6 }
  0xdc   : > { %s3865_s9 = scalar_lea.hbm %s5033_s1, 2048  ;;  %p3866_p5 = scmp.lt.u32.totalorder %s4388_s23, %s5033_s1 }
  0xdd   : > { %p3863_p10 = pnand %p3861_p4, %p3832_p8  ;;  %p3867_p7 = scmp.lt.u32.totalorder %s3865_s9, %s3860_s6 }
  0xde   : > { %p3869_p12 = scmp.lt.u32.totalorder %s3860_s6, %s4388_s23 }
  0xdf   : > { %p3864_p3 = pneg %p3863_p10  ;;  %p3868_p9 = por %p3867_p7, %p3866_p5 }
  0xe1   : > { %p3870_p1 = por %p3869_p12, %p3868_p9 }
  0xe3   : > { %p3871_p13 = pnand %p3870_p1, %p3864_p3 }
  0xe5   : > { %3874 = shalt.err (!%p3871_p13)
}
  0xe6   : > { %s3875_s27 = scalar_lea.vmem %s4382_s11, 1024  ;;  %s4019_s28 = smov [#allocation5]  }
  0xe7   : > { %p3876_p0 = scmp.ne.s32.totalorder %s4382_s11, %s3875_s27  ;;  %s3880_s14 = sshll.u32 %s4019_s28, 4  ;;  %s3881_s14 = int_to_ptr.vmem [resolvable:$false] %s3880_s14 }
  0xe8   : > { %s3882_s13 = scalar_lea.vmem %s3881_s14, 2048  ;;  %p3883_p10 = scmp.lt.s32.totalorder %s4382_s11, %s3881_s14 }
  0xe9   : > { %p3878_p2 = pnand %p3876_p0, %p3832_p8  ;;  %p3884_p5 = scmp.lt.s32.totalorder %s3882_s13, %s3875_s27 }
  0xeb   : > { %p3879_p4 = pneg %p3878_p2  ;;  %p3885_p7 = por %p3884_p5, %p3883_p10 }
  0xed   : > { %p3886_p9 = pnand %p3885_p7, %p3879_p4 }
  0xef   : > { %3889 = shalt.err (!%p3886_p9)
}
  0xf0   : > { %s5084_s6 = smov 4   ;;  %s5085_s4 = smov 64  }
  0xf1   : > { %3513 = dma.hbm_to_vmem [thread:$0]  (!%p4348_p11), %s4388_s23, 1024, %s4382_s11, %s4392_s0, %s5085_s4, %s5085_s4, %s5084_s6  }
  0xf2   : > { %p5086_p8 = scmp.ne.s32.totalorder %s5070_s25, 0 }
  0xf3   : > { %s4424_s15 = sand.u32 (!%p5086_p8), 1, %s4000_s19  }
  0xf4   : > { %553 = sbr.rel (%p5086_p8) target bundleno = 2267 (0x8db), region = 76  ;;  %s3064_s17 = sshll.u32 (!%p5086_p8), %s4424_s15, 2 }
  0xf5   : > { %s556_s9 = scalar_lea.sflag (!%p5086_p8), [#allocation3], %s4424_s15  ;;  %s4428_s30 = scalar_lea.vmem (!%p5086_p8), [#allocation2], %s3064_s17 }
  0xfb   : > { %3963 = dma.done.wait (%p4320_p6), %s556_s9, 64  }
  0xfc   : > { %3965 = vsyncadd (%p4320_p6), %s556_s9, 4294967232  ;;  %s564_s0 = sand.u32 1, %s4128_s24   ;;  %s3065_s25 = sshll.u32 %s4424_s15, 6 }
  0xfd   : > { %s565_s2 = scalar_lea.sflag [#allocation6], %s564_s0  ;;  %s4436_s11 = scalar_lea.vmem [#allocation5], %s3065_s25 }
  0xfe   : > { %3967 = dma.done.wait (%p4320_p6), %s565_s2, 1024  }
  0xff   : > { %3969 = vsyncadd (%p4320_p6), %s565_s2, 4294966272  ;;  %p5087_p11 = scmp.eq.s32.totalorder %s4128_s24, 0 }
 0x101   : > { %3971 = dma.done.wait (%p5087_p11), [#allocation6], 256   ;;  %p5088_p3 = pmov %p5087_p11 }
 0x103   : > { %3973 = vsyncadd (%p5088_p3), [#allocation6], 4294967040  ;;  %p5089_p12 = pmov %p5088_p3 }
 0x104   : > { %p5090_p1 = pmov %p5088_p3 }
 0x105   : > { %3975 = dma.done.wait (%p5089_p12), [#allocation9], 2048  }
 0x106   : > { %3977 = vsyncadd (%p5090_p1), [#allocation9], 4294965248  ;;  %p5091_p13 = pmov %p5090_p1 }
 0x107   : > { %p5092_p0 = pmov %p5090_p1 }
 0x108   : > { %3979 = dma.done.wait (%p5091_p13), [#allocation12], 1536  }
 0x109   : > { %3981 = vsyncadd (%p5092_p0), [#allocation12], 4294965760  ;;  %p5093_p6 = pmov %p5092_p0 }
 0x10a   : > { %p5094_p2 = pmov %p5092_p0 }
 0x10b   : > { %3983 = dma.done.wait (%p5093_p6), [#allocation15], 1024  }
 0x10c   : > { %3985 = vsyncadd (%p5094_p2), [#allocation15], 4294966272  ;;  %v5057_v0 = vmov 0.0   ;;  %vm4021_vm0 = vmmov 0   ;;  %v3582_v1 = vld [vmem:[#allocation7] sm:$0xff]   ;;  %v3583_v2 = vld [vmem:[#allocation7 + $0x8] sm:$0xff]  }
 0x10d   : > { %3240 = vmatprep.subr.bf16.mxu0 %v5057_v0  ;;  %3244 = vmatprep.mubr.msk.bf16.mxu0 %vm4021_vm0, %v5057_v0  ;;  %v3584_v3 = vld [vmem:[#allocation8] sm:$0xff]   ;;  %vm675_vm1 = vcmask 261120   ;;  %v3585_v4 = vld [vmem:[#allocation8 + $0x8] sm:$0xff]   ;;  %v3586_v6 = vld [vmem:[#allocation8 + $0x10] sm:$0xff]   ;;  %vm1040_vm2 = vcmask 523264   ;;  %s5095_s28 = sld [smem:[#allocation30_spill]] }
 0x10e   : > { %3248 = vmatprep.subr.bf16.mxu1 %v5057_v0  ;;  %3264 = vmatprep.mubr.msk.bf16.mxu1 %vm4021_vm0, %v5057_v0  ;;  %v651_v5 = vld [vmem:[%s4428_s30] sm:$0xf]  ;;  %v3587_v7 = vld [vmem:[#allocation8 + $0x18] sm:$0xff]   ;;  %v3588_v8 = vld [vmem:[#allocation8 + $0x20] sm:$0xff]   ;;  %s5096_s6 = sld [smem:[#allocation33_spill]]  ;;  %s5097_s9 = sld [smem:[#allocation34_spill]] }
 0x10f   : > { %3241 = vmatpush3.bf16.msra.mxu0 %v3582_v1  ;;  %3249 = vmatpush3.bf16.msra.mxu1 %v3584_v3  ;;  %v3589_v9 = vld [vmem:[#allocation8 + $0x28] sm:$0xff]   ;;  %v3590_v10 = vld [vmem:[#allocation8 + $0x30] sm:$0xff]   ;;  %v3591_v11 = vld [vmem:[#allocation8 + $0x38] sm:$0xff]   ;;  %s5098_s25 = sld [smem:[#allocation32_spill]]  ;;  %s5099_s5 = sld [smem:[#allocation35_spill]]  ;;  %vm1711_vm3 = vcmask 130112  }
 0x110   : > { %3242 = vmatprep.subr.bf16.mxu0 %v5057_v0  ;;  %3250 = vmatprep.subr.bf16.mxu1 %v5057_v0  ;;  %v3592_v12 = vld [vmem:[#allocation11] sm:$0xff]   ;;  %v3605_v14 = vld [vmem:[#allocation10 + $0x8] sm:$0xff]   ;;  %v3606_v15 = vld [vmem:[#allocation10 + $0x10] sm:$0xff]   ;;  %vm1776_vm4 = vcmask 1041409   ;;  %vm1778_vm5 = vcmask 1042434   ;;  %vm1780_vm6 = vcmask 1043459  }
 0x111   : > { %v3604_v13 = vld [vmem:[#allocation10] sm:$0xff]   ;;  %v3607_v16 = vld [vmem:[#allocation10 + $0x18] sm:$0xff]   ;;  %v3609_v18 = vld [vmem:[#allocation10 + $0x28] sm:$0xff]   ;;  %vm1782_vm7 = vcmask 1044484   ;;  %vm1784_vm8 = vcmask 1045509   ;;  %vm1786_vm9 = vcmask 1046534  }
 0x112   : > { %v3608_v17 = vld [vmem:[#allocation10 + $0x20] sm:$0xff]   ;;  %v3610_v19 = vld [vmem:[#allocation10 + $0x30] sm:$0xff]   ;;  %v3074_v20 = vld [vmem:[%s5035_s3] ss:$0 sm:$0xff]  ;;  %vm1788_vm10 = vcmask 1047559   ;;  %vm1791_vm11 = vcmask 130048  }
 0x113   : > { %3243 = vmatpush3.bf16.msra.mxu0 %v3583_v2  ;;  %3251 = vmatpush3.bf16.msra.mxu1 %v3585_v4  ;;  %v3596_v27 = vld [vmem:[%s4436_s11] sm:$0xff]   ;;  %v3593_v29 = vld [vmem:[#allocation11 + $0x8] sm:$0xff]   ;;  %v3595_v31 = vld [vmem:[#allocation11 + $0x18] sm:$0xff]   ;;  %s3072_s23 = sshll.u32 %s4424_s15, 3  ;;  %s3145_s27 = sshll.u32 %s4128_s24, 7 }
 0x114   : > { %3268 = vmatprep.subr.bf16.mxu0 %v5057_v0  ;;  %3252 = vmatprep.subr.bf16.mxu1 %v5057_v0  ;;  %v3594_v30 = vld [vmem:[#allocation11 + $0x10] sm:$0xff]   ;;  %v3597_v32 = vld [vmem:[%s4436_s11 + $0x8] sm:$0xff]   ;;  %v3598_v33 = vld [vmem:[%s4436_s11 + $0x10] sm:$0xff]   ;;  %s648_s16 = scalar_lea.vmem [#allocation17], %s3072_s23  ;;  %s5107_s13 = sld [smem:[#allocation37_spill]] }
 0x115   : > { %v3599_v34 = vld [vmem:[%s4436_s11 + $0x18] sm:$0xff]   ;;  %v3600_v35 = vld [vmem:[%s4436_s11 + $0x20] sm:$0xff]   ;;  %v3601_v36 = vld [vmem:[%s4436_s11 + $0x28] sm:$0xff]   ;;  %s2866_s4 = sshll.u32 %s648_s16, 4  ;;  %s2840_s17 = scalar_lea.sflag [#allocation18], %s4424_s15  ;;  %s2867_s4 = int_to_ptr.vmem [resolvable:$true] %s2866_s4 }
 0x116   : > { %3245 = vmatmul.mubr.msk.bf16.vlgmr.msra.gmra.mrb[0].mxu0 %vm675_vm1, %v651_v5  ;;  %v3602_v37 = vld [vmem:[%s4436_s11 + $0x30] sm:$0xff]   ;;  %v3603_v38 = vld [vmem:[%s4436_s11 + $0x38] sm:$0xff]   ;;  %v3611_v39 = vld [vmem:[#allocation10 + $0x38] sm:$0xff]   ;;  %p5108_p10 = scmp.ne.s32.totalorder %s5079_s22, 0  ;;  %s4025_s30 = smov [#allocation17]  }
 0x117   : > { %3284 = vmatprep.mubr.msk.bf16.mxu0 %vm4021_vm0, %v5057_v0  ;;  %3253 = vmatpush3.bf16.msra.mxu1 %v3586_v6  ;;  %v3612_v40 = vld [vmem:[#allocation13] sm:$0xff]   ;;  %v3078_v41 = vld [vmem:[%s5095_s28] ss:$0 sm:$0xff]  ;;  %v3614_v50 = vld [vmem:[#allocation13 + $0x10] sm:$0xff]   ;;  %s3894_s0 = sshll.u32 %s4025_s30, 4  ;;  %s3895_s0 = int_to_ptr.vmem [resolvable:$false] %s3894_s0 }
 0x118   : > { %3254 = vmatprep.subr.bf16.mxu1 %v5057_v0  ;;  %3269 = vmatpush3.bf16.msra.mxu0 %v3604_v13  ;;  %v3613_v49 = vld [vmem:[#allocation13 + $0x8] sm:$0xff]   ;;  %v3615_v51 = vld [vmem:[#allocation13 + $0x18] sm:$0xff]   ;;  %v3616_v54 = vld [vmem:[#allocation13 + $0x20] sm:$0xff]   ;;  %p3897_p9 = scmp.lt.s32.totalorder %s2867_s4, %s3895_s0 }
 0x119   : > { %3270 = vmatprep.subr.bf16.mxu0 %v5057_v0  ;;  %v4508_v52 = vld [vmem:[%s5096_s6] ss:$0 sm:$0xff] }
 0x11a   : > { %v3617_v2 = vld [vmem:[#allocation13 + $0x28] sm:$0xff]   ;;  %s4954_s6 = scalar_lea.hbm %s5107_s13, %s3145_s27 }
 0x11b   : > { %3255 = vmatpush3.bf16.msra.mxu1 %v3587_v7  ;;  %v3618_v7 = vld [vmem:[#allocation13 + $0x30] sm:$0xff]  }
 0x11c   : > { %3256 = vmatprep.subr.bf16.mxu1 %v5057_v0  ;;  %3271 = vmatpush3.bf16.msra.mxu0 %v3605_v14 }
 0x11d   : > { %3272 = vmatprep.subr.bf16.mxu0 %v5057_v0 }
 0x11f   : > { %3257 = vmatpush3.bf16.msra.mxu1 %v3588_v8 }
 0x120   : > { %3258 = vmatprep.subr.bf16.mxu1 %v5057_v0  ;;  %3273 = vmatpush3.bf16.msra.mxu0 %v3606_v15 }
 0x121   : > { %3274 = vmatprep.subr.bf16.mxu0 %v5057_v0 }
 0x123   : > { %3259 = vmatpush3.bf16.msra.mxu1 %v3589_v9 }
 0x124   : > { %3260 = vmatprep.subr.bf16.mxu1 %v5057_v0  ;;  %3275 = vmatpush3.bf16.msra.mxu0 %v3607_v16 }
 0x125   : > { %3276 = vmatprep.subr.bf16.mxu0 %v5057_v0 }
 0x127   : > { %3261 = vmatpush3.bf16.msra.mxu1 %v3590_v10 }
 0x128   : > { %3262 = vmatprep.subr.bf16.mxu1 %v5057_v0  ;;  %3277 = vmatpush3.bf16.msra.mxu0 %v3608_v17 }
 0x129   : > { %3278 = vmatprep.subr.bf16.mxu0 %v5057_v0 }
 0x12b   : > { %3263 = vmatpush3.bf16.msra.mxu1 %v3591_v11 }
 0x12c   : > { %3288 = vmatprep.subr.bf16.mxu1 %v3592_v12  ;;  %3279 = vmatpush3.bf16.msra.mxu0 %v3609_v18  ;;  %v3619_v18 = vld [vmem:[#allocation13 + $0x38] sm:$0xff]  }
 0x12d   : > { %3280 = vmatprep.subr.bf16.mxu0 %v5057_v0 }
 0x130   : > { %3281 = vmatpush3.bf16.msra.mxu0 %v3610_v19 }
 0x131   : > { %3282 = vmatprep.subr.bf16.mxu0 %v5057_v0 }
 0x134   : > { %3283 = vmatpush3.bf16.msra.mxu0 %v3611_v39 }
 0x135   : > { %3312 = vmatprep.subr.bf16.mxu0 %v3612_v40 }
 0x1e9   : > { %v713_v21 = vpop.f32.mrb[0].mxu0 }
 0x1ea   : > { %v714_v22 = vadd.f32 %v3074_v20, %v713_v21  ;;  %v3246_v23 = vpop.f32.mrb[1].mxu0 }
 0x1eb   : > { %v716_v24 = vpop.f32.mrb[2].mxu0 }
 0x1ec   : > { %v719_v25 = vmax.f32 %v714_v22, 0.0  ;;  %v3247_v26 = vpop.f32.mrb[3].mxu0 }
 0x1ee   : > { %v720_v28 = vpack.c.bf16 %v719_v25, %v719_v25 }
 0x1f0   : > { %3265 = vmatmul.mubr.bf16.vlgmr.msra.gmra.mrb[0].mxu1 %v720_v28 }
 0x1f1   : > { %3289 = vmatpush3.bf16.msra.mxu1 %v3592_v12  ;;  %3296 = vmatprep.mubr.msk.bf16.mxu1 %vm1040_vm2, %v3596_v27 }
 0x1f2   : > { %3290 = vmatprep.subr.bf16.mxu1 %v3593_v29 }
 0x1f5   : > { %3291 = vmatpush3.bf16.msra.mxu1 %v3593_v29 }
 0x1f6   : > { %3292 = vmatprep.subr.bf16.mxu1 %v3594_v30 }
 0x1f9   : > { %3293 = vmatpush3.bf16.msra.mxu1 %v3594_v30 }
 0x1fa   : > { %3294 = vmatprep.subr.bf16.mxu1 %v3595_v31 }
 0x1fd   : > { %3295 = vmatpush3.bf16.msra.mxu1 %v3595_v31 }
 0x200   : > { %3297 = vmatmul.mubr.msk.bf16.vlgmr.msra.gmra.mrb[4].mxu1 %vm1040_vm2, %v3597_v32 }
 0x201   : > { %3300 = vmatprep.mubr.msk.bf16.mxu1 %vm1040_vm2, %v3598_v33 }
 0x208   : > { %3301 = vmatmul.mubr.msk.bf16.gmra.mrb[8].mxu1 %vm1040_vm2, %v3599_v34 }
 0x209   : > { %3304 = vmatprep.mubr.msk.bf16.mxu1 %vm1040_vm2, %v3600_v35 }
 0x210   : > { %3305 = vmatmul.mubr.msk.bf16.gmra.mrb[12].mxu1 %vm1040_vm2, %v3601_v36 }
 0x211   : > { %3308 = vmatprep.mubr.msk.bf16.mxu1 %vm1040_vm2, %v3602_v37 }
 0x218   : > { %3309 = vmatmul.mubr.msk.bf16.gmra.mrb[16].mxu1 %vm1040_vm2, %v3603_v38 }
 0x2c3   : > { %v826_v42 = vpop.f32.mrb[0].mxu1 }
 0x2c4   : > { %v827_v43 = vadd.f32 %v3078_v41, %v826_v42  ;;  %v3266_v44 = vpop.f32.mrb[1].mxu1 }
 0x2c5   : > { %v829_v45 = vpop.f32.mrb[2].mxu1 }
 0x2c6   : > { %v832_v46 = vmax.f32 %v827_v43, 0.0  ;;  %v3267_v47 = vpop.f32.mrb[3].mxu1 }
 0x2c8   : > { %v833_v48 = vpack.c.bf16 %v832_v46, %v832_v46 }
 0x2ca   : > { %3285 = vmatmul.mubr.bf16.vlgmr.msra.gmra.mrb[4].mxu0 %v833_v48 }
 0x2cb   : > { %3313 = vmatpush3.bf16.msra.mxu0 %v3612_v40 }
 0x2cc   : > { %3314 = vmatprep.subr.bf16.mxu0 %v3613_v49 }
 0x2cf   : > { %3315 = vmatpush3.bf16.msra.mxu0 %v3613_v49 }
 0x2d0   : > { %3316 = vmatprep.subr.bf16.mxu0 %v3614_v50 }
 0x2d3   : > { %3317 = vmatpush3.bf16.msra.mxu0 %v3614_v50  ;;  %v3298_v53 = vpop.f32.mrb[4].mxu1  ;;  %v3620_v50 = vld [vmem:[#allocation14] sm:$0xff]  }
 0x2d4   : > { %3318 = vmatprep.subr.bf16.mxu0 %v3615_v51  ;;  %v1108_v55 = vadd.f32 %v3298_v53, %v4508_v52  ;;  %v1099_v56 = vpop.f32.mrb[5].mxu1  ;;  %3344 = vmatprep.subr.bf16.mxu1 %v3620_v50  ;;  %v3622_v53 = vld [vmem:[#allocation14 + $0x10] sm:$0xff]  }
 0x2d5   : > { %v1100_v57 = vadd.f32 %v4508_v52, %v1099_v56  ;;  %v3299_v58 = vpop.f32.mrb[6].mxu1  ;;  %3345 = vmatpush3.bf16.msra.mxu1 %v3620_v50  ;;  %v3626_v56 = vld [vmem:[#allocation14 + $0x30] sm:$0xff]  }
 0x2d6   : > { %v1164_v59 = vmax.f32 %v1108_v55, 0.0  ;;  %v1111_v60 = vadd.f32 %v3299_v58, %v4508_v52  ;;  %v1102_v61 = vpop.f32.mrb[7].mxu1  ;;  %v3625_v55 = vld [vmem:[#allocation14 + $0x28] sm:$0xff]  }
 0x2d7   : > { %3319 = vmatpush3.bf16.msra.mxu0 %v3615_v51  ;;  %v1162_v62 = vmax.f32 %v1100_v57, 0.0  ;;  %v1103_v63 = vadd.f32 %v4508_v52, %v1102_v61  ;;  %v3621_v51 = vld [vmem:[#allocation14 + $0x8] sm:$0xff]   ;;  %v3627_v57 = vld [vmem:[#allocation14 + $0x38] sm:$0xff]  }
 0x2d8   : > { %3320 = vmatprep.subr.bf16.mxu0 %v3616_v54  ;;  %v1165_v1 = vmax.f32 %v1111_v60, 0.0  ;;  %3346 = vmatprep.subr.bf16.mxu1 %v3621_v51 }
 0x2d9   : > { %v1163_v3 = vmax.f32 %v1103_v63, 0.0  ;;  %3347 = vmatpush3.bf16.msra.mxu1 %v3621_v51 }
 0x2da   : > { %v1179_v4 = vpack.c.bf16 %v1165_v1, %v1164_v59  ;;  %3348 = vmatprep.subr.bf16.mxu1 %v3622_v53 }
 0x2db   : > { %3321 = vmatpush3.bf16.msra.mxu0 %v3616_v54  ;;  %v1178_v5 = vpack.c.bf16 %v1163_v3, %v1162_v62  ;;  %v3302_v6 = vpop.f32.mrb[8].mxu1  ;;  %v3624_v54 = vld [vmem:[#allocation14 + $0x20] sm:$0xff]   ;;  %v3117_v62 = vld [vmem:[%s5097_s9] ss:$0 sm:$0xff]  ;;  %s3890_s9 = scalar_lea.vmem %s2867_s4, 128 }
 0x2dc   : > { %3322 = vmatprep.subr.bf16.mxu0 %v3617_v2  ;;  %v1124_v8 = vadd.f32 %v3302_v6, %v4508_v52  ;;  %v1115_v9 = vpop.f32.mrb[9].mxu1  ;;  %p3891_p4 = scmp.ne.s32.totalorder %s2867_s4, %s3890_s9 }
 0x2dd   : > { %v1116_v10 = vadd.f32 %v4508_v52, %v1115_v9  ;;  %v3303_v11 = vpop.f32.mrb[10].mxu1  ;;  %3328 = vmatprep.mubr.bf16.mxu0 %v1178_v5  ;;  %3349 = vmatpush3.bf16.msra.mxu1 %v3622_v53 }
 0x2de   : > { %v1168_v12 = vmax.f32 %v1124_v8, 0.0  ;;  %v1127_v13 = vadd.f32 %v3303_v11, %v4508_v52  ;;  %v1118_v14 = vpop.f32.mrb[11].mxu1  ;;  %p3892_p5 = pnand %p3891_p4, %p5108_p10 }
 0x2df   : > { %3323 = vmatpush3.bf16.msra.mxu0 %v3617_v2  ;;  %v1166_v15 = vmax.f32 %v1116_v10, 0.0  ;;  %v1119_v16 = vadd.f32 %v4508_v52, %v1118_v14 }
 0x2e0   : > { %3324 = vmatprep.subr.bf16.mxu0 %v3618_v7  ;;  %v1169_v17 = vmax.f32 %v1127_v13, 0.0  ;;  %p3893_p7 = pneg %p3892_p5 }
 0x2e1   : > { %v1167_v19 = vmax.f32 %v1119_v16, 0.0 }
 0x2e2   : > { %v1181_v20 = vpack.c.bf16 %v1169_v17, %v1168_v12 }
 0x2e3   : > { %3325 = vmatpush3.bf16.msra.mxu0 %v3618_v7  ;;  %v1180_v21 = vpack.c.bf16 %v1167_v19, %v1166_v15  ;;  %v3306_v22 = vpop.f32.mrb[12].mxu1 }
 0x2e4   : > { %3326 = vmatprep.subr.bf16.mxu0 %v3619_v18  ;;  %v1140_v23 = vadd.f32 %v3306_v22, %v4508_v52  ;;  %v1131_v24 = vpop.f32.mrb[13].mxu1 }
 0x2e5   : > { %v1132_v25 = vadd.f32 %v4508_v52, %v1131_v24  ;;  %v3307_v26 = vpop.f32.mrb[14].mxu1 }
 0x2e6   : > { %v1172_v27 = vmax.f32 %v1140_v23, 0.0  ;;  %v1143_v28 = vadd.f32 %v3307_v26, %v4508_v52  ;;  %v1134_v29 = vpop.f32.mrb[15].mxu1 }
 0x2e7   : > { %3327 = vmatpush3.bf16.msra.mxu0 %v3619_v18  ;;  %v1170_v30 = vmax.f32 %v1132_v25, 0.0  ;;  %v1135_v31 = vadd.f32 %v4508_v52, %v1134_v29 }
 0x2e8   : > { %v1173_v32 = vmax.f32 %v1143_v28, 0.0 }
 0x2e9   : > { %v1171_v33 = vmax.f32 %v1135_v31, 0.0 }
 0x2ea   : > { %3329 = vmatmul.mubr.bf16.vlgmr.msra.gmra.mrb[8].mxu0 %v1179_v4  ;;  %v1183_v34 = vpack.c.bf16 %v1173_v32, %v1172_v27 }
 0x2eb   : > { %3332 = vmatprep.mubr.bf16.mxu0 %v1180_v21  ;;  %v1182_v35 = vpack.c.bf16 %v1171_v33, %v1170_v30  ;;  %v3310_v36 = vpop.f32.mrb[16].mxu1 }
 0x2ec   : > { %v1156_v37 = vadd.f32 %v3310_v36, %v4508_v52  ;;  %v1147_v38 = vpop.f32.mrb[17].mxu1 }
 0x2ed   : > { %v1148_v39 = vadd.f32 %v4508_v52, %v1147_v38  ;;  %v3311_v40 = vpop.f32.mrb[18].mxu1 }
 0x2ee   : > { %v1176_v41 = vmax.f32 %v1156_v37, 0.0  ;;  %v1159_v42 = vadd.f32 %v3311_v40, %v4508_v52  ;;  %v1150_v43 = vpop.f32.mrb[19].mxu1 }
 0x2ef   : > { %v1174_v44 = vmax.f32 %v1148_v39, 0.0  ;;  %v1151_v45 = vadd.f32 %v4508_v52, %v1150_v43  ;;  %v3623_v52 = vld [vmem:[#allocation14 + $0x18] sm:$0xff]  }
 0x2f0   : > { %v1177_v46 = vmax.f32 %v1159_v42, 0.0  ;;  %3350 = vmatprep.subr.bf16.mxu1 %v3623_v52 }
 0x2f1   : > { %v1175_v47 = vmax.f32 %v1151_v45, 0.0  ;;  %3351 = vmatpush3.bf16.msra.mxu1 %v3623_v52 }
 0x2f2   : > { %3333 = vmatmul.mubr.bf16.gmra.mrb[12].mxu0 %v1181_v20  ;;  %v1185_v48 = vpack.c.bf16 %v1177_v46, %v1176_v41  ;;  %3352 = vmatprep.subr.bf16.mxu1 %v3624_v54 }
 0x2f3   : > { %3336 = vmatprep.mubr.bf16.mxu0 %v1182_v35  ;;  %v1184_v49 = vpack.c.bf16 %v1175_v47, %v1174_v44 }
 0x2f5   : > { %3353 = vmatpush3.bf16.msra.mxu1 %v3624_v54 }
 0x2f6   : > { %3354 = vmatprep.subr.bf16.mxu1 %v3625_v55 }
 0x2f9   : > { %3355 = vmatpush3.bf16.msra.mxu1 %v3625_v55 }
 0x2fa   : > { %3337 = vmatmul.mubr.bf16.gmra.mrb[16].mxu0 %v1183_v34  ;;  %3356 = vmatprep.subr.bf16.mxu1 %v3626_v56 }
 0x2fb   : > { %3340 = vmatprep.mubr.bf16.mxu0 %v1184_v49 }
 0x2fd   : > { %3357 = vmatpush3.bf16.msra.mxu1 %v3626_v56  ;;  %v5055_v56 = vmov 0.0|0.0  }
 0x2fe   : > { %3358 = vmatprep.subr.bf16.mxu1 %v3627_v57  ;;  %3432 = vmatprep.subr.bf16.mxu0 %v5055_v56 }
 0x301   : > { %3359 = vmatpush3.bf16.msra.mxu1 %v3627_v57  ;;  %v4023_v57 = vmov 1966171168  }
 0x302   : > { %3341 = vmatmul.mubr.bf16.gmra.mrb[20].mxu0 %v1185_v48  ;;  %3441 = vmatprep.subr.bf16.mxu1 %v5055_v56 }
 0x303   : > { %3380 = vmatprep.mubr.msk.f32.mxu0 %vm4021_vm0, %v5057_v0 }
 0x39d   : > { %v4528_v58 = vpop.f32.mrb[4].mxu0 }
 0x39e   : > { %v3286_v59 = vpop.f32.mrb[5].mxu0 }
 0x39f   : > { %v942_v60 = vpop.f32.mrb[6].mxu0  ;;  %v1549_v59 = vunpack.c.l.s4 %v4023_v57 }
 0x3a0   : > { %v3287_v61 = vpop.f32.mrb[7].mxu0  ;;  %v1551_v60 = vlaneseq }
 0x3a1   : > { %v1550_v61 = vunpack.c.0.s8 %v1549_v59 }
 0x3bd   : > { %v3330_v63 = vpop.f32.mrb[8].mxu0 }
 0x3be   : > { %v1300_v1 = vadd.f32 %v3330_v63, %v3117_v62  ;;  %v1291_v2 = vpop.f32.mrb[9].mxu0  ;;  %v3087_v63 = vld [vmem:[%s5098_s25] ss:$0 sm:$0xff]  ;;  %s3896_s25 = scalar_lea.vmem %s3895_s0, 256 }
 0x3bf   : > { %v1292_v3 = vadd.f32 %v3117_v62, %v1291_v2  ;;  %v3331_v4 = vpop.f32.mrb[10].mxu0  ;;  %p3898_p8 = scmp.lt.s32.totalorder %s3896_s25, %s3890_s9 }
 0x3c0   : > { %v1303_v5 = vadd.f32 %v3331_v4, %v3117_v62  ;;  %v1294_v6 = vpop.f32.mrb[11].mxu0  ;;  %v1356_v8 = vmax.f32 %v1300_v1, 0.0  ;;  %v940_v1 = vadd.f32 %v3087_v63, %v4528_v58 }
 0x3c1   : > { %v1295_v7 = vadd.f32 %v3117_v62, %v1294_v6  ;;  %v1354_v10 = vmax.f32 %v1292_v3, 0.0  ;;  %v4548_v6 = vld [vmem:[%s5099_s5] ss:$0 sm:$0xff]  ;;  %p3899_p11 = por %p3898_p8, %p3897_p9 }
 0x3c2   : > { %v1357_v9 = vmax.f32 %v1303_v5, 0.0 }
 0x3c3   : > { %v1355_v11 = vmax.f32 %v1295_v7, 0.0  ;;  %p3900_p3 = pnand %p3899_p11, %p3893_p7 }
 0x3c4   : > { %v1371_v12 = vpack.c.bf16 %v1357_v9, %v1356_v8 }
 0x3c5   : > { %v1370_v13 = vpack.c.bf16 %v1355_v11, %v1354_v10  ;;  %v3334_v14 = vpop.f32.mrb[12].mxu0  ;;  %v1547_v10 = vcombine.high %v940_v1, %v940_v1 }
 0x3c6   : > { %v1316_v15 = vadd.f32 %v3334_v14, %v3117_v62  ;;  %v1307_v16 = vpop.f32.mrb[13].mxu0 }
 0x3c7   : > { %v1308_v17 = vadd.f32 %v3117_v62, %v1307_v16  ;;  %v3335_v18 = vpop.f32.mrb[14].mxu0  ;;  %3360 = vmatprep.mubr.bf16.mxu1 %v1370_v13 }
 0x3c8   : > { %v1319_v19 = vadd.f32 %v3335_v18, %v3117_v62  ;;  %v1310_v20 = vpop.f32.mrb[15].mxu0  ;;  %3361 = vmatmul.mubr.bf16.vlgmr.msra.gmra.mrb[20].mxu1 %v1371_v12  ;;  %v1360_v22 = vmax.f32 %v1316_v15, 0.0 }
 0x3c9   : > { %v1311_v21 = vadd.f32 %v3117_v62, %v1310_v20  ;;  %v1358_v24 = vmax.f32 %v1308_v17, 0.0 }
 0x3ca   : > { %v1361_v23 = vmax.f32 %v1319_v19, 0.0 }
 0x3cb   : > { %v1359_v25 = vmax.f32 %v1311_v21, 0.0 }
 0x3cc   : > { %v1373_v26 = vpack.c.bf16 %v1361_v23, %v1360_v22 }
 0x3cd   : > { %v1372_v27 = vpack.c.bf16 %v1359_v25, %v1358_v24  ;;  %v3338_v28 = vpop.f32.mrb[16].mxu0 }
 0x3ce   : > { %v1332_v29 = vadd.f32 %v3338_v28, %v3117_v62  ;;  %v1323_v30 = vpop.f32.mrb[17].mxu0 }
 0x3cf   : > { %v1324_v31 = vadd.f32 %v3117_v62, %v1323_v30  ;;  %v3339_v32 = vpop.f32.mrb[18].mxu0  ;;  %3364 = vmatprep.mubr.bf16.mxu1 %v1372_v27 }
 0x3d0   : > { %v1335_v33 = vadd.f32 %v3339_v32, %v3117_v62  ;;  %v1326_v34 = vpop.f32.mrb[19].mxu0  ;;  %3365 = vmatmul.mubr.bf16.gmra.mrb[24].mxu1 %v1373_v26  ;;  %v1364_v36 = vmax.f32 %v1332_v29, 0.0 }
 0x3d1   : > { %v1327_v35 = vadd.f32 %v3117_v62, %v1326_v34  ;;  %v1362_v38 = vmax.f32 %v1324_v31, 0.0 }
 0x3d2   : > { %v1365_v37 = vmax.f32 %v1335_v33, 0.0 }
 0x3d3   : > { %v1363_v39 = vmax.f32 %v1327_v35, 0.0 }
 0x3d4   : > { %v1375_v40 = vpack.c.bf16 %v1365_v37, %v1364_v36 }
 0x3d5   : > { %v1374_v41 = vpack.c.bf16 %v1363_v39, %v1362_v38  ;;  %v3342_v42 = vpop.f32.mrb[20].mxu0 }
 0x3d6   : > { %v1348_v43 = vadd.f32 %v3342_v42, %v3117_v62  ;;  %v1339_v44 = vpop.f32.mrb[21].mxu0 }
 0x3d7   : > { %v1340_v45 = vadd.f32 %v3117_v62, %v1339_v44  ;;  %v3343_v46 = vpop.f32.mrb[22].mxu0  ;;  %3368 = vmatprep.mubr.bf16.mxu1 %v1374_v41 }
 0x3d8   : > { %v1351_v47 = vadd.f32 %v3343_v46, %v3117_v62  ;;  %v1342_v48 = vpop.f32.mrb[23].mxu0  ;;  %3369 = vmatmul.mubr.bf16.gmra.mrb[28].mxu1 %v1375_v40  ;;  %v1368_v50 = vmax.f32 %v1348_v43, 0.0 }
 0x3d9   : > { %v1343_v49 = vadd.f32 %v3117_v62, %v1342_v48  ;;  %v1366_v53 = vmax.f32 %v1340_v45, 0.0  ;;  %v4538_v62 = vshrl.u32 %v1551_v60, 7 }
 0x3da   : > { %v1369_v51 = vmax.f32 %v1351_v47, 0.0 }
 0x3db   : > { %v1367_v52 = vmax.f32 %v1343_v49, 0.0  ;;  %v1553_v2 = vsub.s32 %v1550_v61, %v4538_v62  ;;  %v4551_v7 = vsub.s32 0, %v4538_v62 }
 0x3dc   : > { %v1377_v54 = vpack.c.bf16 %v1369_v51, %v1368_v50 }
 0x3dd   : > { %v1376_v55 = vpack.c.bf16 %v1367_v52, %v1366_v53  ;;  %v1554_v3 = vrot.slane %v940_v1, %v1553_v2  ;;  %v1561_v21 = vrot.slane %v1547_v10, %v1553_v2 }
 0x3df   : > { %3372 = vmatprep.mubr.bf16.mxu1 %v1376_v55  ;;  %v1562_v4 = vcombine.high %v1554_v3, %v1554_v3  ;;  %v1570_v8 = vrot.slane %v1554_v3, %v1553_v2  ;;  %v1563_v29 = vcombine.high %v1561_v21, %v1561_v21  ;;  %v1577_v46 = vrot.slane %v1561_v21, %v1553_v2 }
 0x3e0   : > { %3373 = vmatmul.mubr.bf16.gmra.mrb[32].mxu1 %v1377_v54 }
 0x3e1   : > { %3401 = vmatprep.mubr.msk.f32.mxu1 %vm4021_vm0, %v5057_v0  ;;  %v1584_v5 = vrot.slane %v1562_v4, %v1553_v2  ;;  %v1599_v15 = vrot.slane %v1570_v8, %v4551_v7  ;;  %v1592_v27 = vcombine.high %v1570_v8, %v1570_v8  ;;  %v1591_v43 = vrot.slane %v1563_v29, %v1553_v2 }
 0x3e2   : > { %v1615_v52 = vrot.slane %v1577_v46, %v4551_v7  ;;  %v1701_v29 = vand.u32 127, %v1551_v60 }
 0x3e3   : > { %v1603_v12 = vrot.slane %v1584_v5, %v4551_v7  ;;  %v1594_v24 = vcombine.high %v1584_v5, %v1584_v5  ;;  %v1607_v35 = vrot.slane %v1592_v27, %v4551_v7  ;;  %v1619_v50 = vrot.slane %v1591_v43, %v4551_v7 }
 0x3e4   : > { %v1595_v2 = vcombine.high %v1591_v43, %v1591_v43  ;;  %v1593_v5 = vcombine.high %v1577_v46, %v1577_v46 }
 0x3e5   : > { %v1611_v32 = vrot.slane %v1594_v24, %v4551_v7 }
 0x49b   : > { %v3362_v9 = vpop.f32.mrb[20].mxu1 }
 0x49c   : > { %v4554_v11 = vadd.f32 %v3362_v9, %v4548_v6  ;;  %v1483_v58 = vpop.f32.mrb[21].mxu1 }
 0x49d   : > { %v1484_v13 = vadd.f32 %v4548_v6, %v1483_v58  ;;  %v3363_v14 = vpop.f32.mrb[22].mxu1  ;;  %v1627_v58 = vrot.slane %v1595_v2, %v4551_v7 }
 0x49e   : > { %v4560_v16 = vadd.f32 %v3363_v14, %v4548_v6  ;;  %v1486_v17 = vpop.f32.mrb[23].mxu1  ;;  %v1638_v18 = vmul.f32 %v1603_v12, %v4554_v11  ;;  %v1623_v14 = vrot.slane %v1593_v5, %v4551_v7 }
 0x49f   : > { %v1487_v19 = vadd.f32 %v4548_v6, %v1486_v17  ;;  %v1636_v20 = vmul.f32 %v1599_v15, %v1484_v13 }
 0x4a0   : > { %v3436_v22 = vpack.c.bf16 %v4560_v16, %v4554_v11  ;;  %1656 = vadd.xlane.f32.xlu1 %v1638_v18  ;;  %v1639_v23 = vmul.f32 %v1603_v12, %v4560_v16 }
 0x4a1   : > { %v3433_v25 = vpack.c.bf16 %v1487_v19, %v1484_v13  ;;  %1652 = vadd.xlane.f32.xlu0 %v1636_v20  ;;  %v1637_v26 = vmul.f32 %v1599_v15, %v1487_v19 }
 0x4a3   : > { %v3366_v28 = vpop.f32.mrb[24].mxu1  ;;  %3434 = vmatpush3.bf16.msra.mxu0 %v3433_v25 }
 0x4a4   : > { %v1508_v30 = vadd.f32 %v3366_v28, %v4548_v6  ;;  %1658 = vadd.xlane.f32.xlu1 %v1639_v23  ;;  %v1499_v31 = vpop.f32.mrb[25].mxu1  ;;  %3435 = vmatprep.subr.bf16.mxu0 %v5055_v56 }
 0x4a5   : > { %v4571_v33 = vadd.f32 %v4548_v6, %v1499_v31  ;;  %v3367_v34 = vpop.f32.mrb[26].mxu1  ;;  %1654 = vadd.xlane.f32.xlu0 %v1637_v26  ;;  %v1706_v31 = vadd.s32 4294967288, %v1701_v29 }
 0x4a6   : > { %v1511_v36 = vadd.f32 %v3367_v34, %v4548_v6  ;;  %v1502_v37 = vpop.f32.mrb[27].mxu1  ;;  %v1642_v38 = vmul.f32 %v1611_v32, %v1508_v30 }
 0x4a7   : > { %v4576_v39 = vadd.f32 %v4548_v6, %v1502_v37  ;;  %v1640_v40 = vmul.f32 %v1607_v35, %v4571_v33  ;;  %v4648_v37 = vsub.s32 %v1701_v29, %v4538_v62 }
 0x4a8   : > { %v3442_v41 = vpack.c.bf16 %v1511_v36, %v1508_v30  ;;  %v1643_v42 = vmul.f32 %v1611_v32, %v1511_v36 }
 0x4a9   : > { %1664 = vadd.xlane.f32.xlu0 %v1642_v38  ;;  %v1641_v45 = vmul.f32 %v1607_v35, %v4576_v39  ;;  %v4643_v35 = vsub.s32 %v1706_v31, %v4538_v62 }
 0x4aa   : > { %3443 = vmatpush3.bf16.msra.mxu1 %v3442_v41  ;;  %1666 = vadd.xlane.f32.xlu1 %v1643_v42 }
 0x4ab   : > { %v3370_v47 = vpop.f32.mrb[28].mxu1  ;;  %3447 = vmatprep.subr.bf16.mxu1 %v5055_v56 }
 0x4ac   : > { %v4584_v48 = vadd.f32 %v3370_v47, %v4548_v6  ;;  %v1515_v49 = vpop.f32.mrb[29].mxu1 }
 0x4ad   : > { %v4588_v51 = vadd.f32 %v4548_v6, %v1515_v49  ;;  %v3371_v53 = vpop.f32.mrb[30].mxu1  ;;  %1660 = vadd.xlane.f32.xlu0 %v1640_v40 }
 0x4ae   : > { %v4592_v54 = vadd.f32 %v3371_v53, %v4548_v6  ;;  %v1518_v55 = vpop.f32.mrb[31].mxu1  ;;  %1662 = vadd.xlane.f32.xlu1 %v1641_v45  ;;  %v1646_v57 = vmul.f32 %v1619_v50, %v4584_v48 }
 0x4af   : > { %v4596_v59 = vadd.f32 %v4548_v6, %v1518_v55  ;;  %v1644_v61 = vmul.f32 %v1615_v52, %v4588_v51 }
 0x4b0   : > { %v1647_v1 = vmul.f32 %v1619_v50, %v4592_v54 }
 0x4b1   : > { %1672 = vadd.xlane.f32.xlu0 %v1646_v57  ;;  %v1645_v4 = vmul.f32 %v1615_v52, %v4596_v59 }
 0x4b2   : > { %1674 = vadd.xlane.f32.xlu1 %v1647_v1 }
 0x4b3   : > { %v3374_v8 = vpop.f32.mrb[32].mxu1 }
 0x4b4   : > { %v4606_v9 = vadd.f32 %v3374_v8, %v4548_v6  ;;  %v1531_v10 = vpop.f32.mrb[33].mxu1 }
 0x4b5   : > { %v4610_v12 = vadd.f32 %v4548_v6, %v1531_v10  ;;  %v3375_v13 = vpop.f32.mrb[34].mxu1  ;;  %1668 = vadd.xlane.f32.xlu0 %v1644_v61 }
 0x4b6   : > { %v4614_v15 = vadd.f32 %v3375_v13, %v4548_v6  ;;  %v1534_v17 = vpop.f32.mrb[35].mxu1  ;;  %1670 = vadd.xlane.f32.xlu1 %v1645_v4  ;;  %v1650_v18 = vmul.f32 %v1627_v58, %v4606_v9 }
 0x4b7   : > { %v4618_v19 = vadd.f32 %v4548_v6, %v1534_v17  ;;  %v1648_v20 = vmul.f32 %v1623_v14, %v4610_v12 }
 0x4b8   : > { %v1651_v23 = vmul.f32 %v1627_v58, %v4614_v15 }
 0x4b9   : > { %1676 = vadd.xlane.f32.xlu0 %v1648_v20  ;;  %v1649_v25 = vmul.f32 %v1623_v14, %v4618_v19 }
 0x4bb   : > { %1678 = vadd.xlane.f32.xlu1 %v1649_v25 }
 0x4bd   : > { %1680 = vadd.xlane.f32.xlu0 %v1650_v18 }
 0x4bf   : > { %1682 = vadd.xlane.f32.xlu1 %v1651_v23 }
 0x52d   : > { %v4627_v26 = vpop.xlane.xlu1 %1656 }
 0x52e   : > { %v4629_v6 = vpop.xlane.xlu0 %1652  ;;  %v1716_v45 = vrot.slane %v4627_v26, %v4648_v37 }
 0x52f   : > { %v1705_v46 = vrot.slane %v4629_v6, %v4648_v37 }
 0x531   : > { %v4633_v28 = vpop.xlane.xlu1 %1658 }
 0x532   : > { %v4631_v27 = vpop.xlane.xlu0 %1654  ;;  %v1720_v60 = vrot.slane %v4633_v28, %v4643_v35 }
 0x533   : > { %v1710_v40 = vrot.slane %v4631_v27, %v4643_v35 }
 0x534   : > { %v1721_v49 = vsel %vm1711_vm3, %v1720_v60, %v1716_v45 }
 0x535   : > { %v1712_v50 = vsel %vm1711_vm3, %v1710_v40, %v1705_v46 }
 0x536   : > { %v4636_v30 = vpop.xlane.xlu0 %1664  ;;  %v1777_v2 = vsel %vm1776_vm4, %v1721_v49, %v1712_v50 }
 0x537   : > { %v4638_v32 = vpop.xlane.xlu1 %1666  ;;  %v1734_v61 = vrot.slane %v4636_v30, %v4648_v37 }
 0x538   : > { %v1738_v1 = vrot.slane %v4638_v32, %v4643_v35 }
 0x53a   : > { %v4640_v34 = vpop.xlane.xlu0 %1660  ;;  %v1739_v58 = vsel %vm1711_vm3, %v1738_v1, %v1734_v61 }
 0x53b   : > { %v4645_v36 = vpop.xlane.xlu1 %1662  ;;  %v1725_v42 = vrot.slane %v4640_v34, %v4648_v37 }
 0x53c   : > { %v1729_v43 = vrot.slane %v4645_v36, %v4643_v35 }
 0x53e   : > { %v4650_v38 = vpop.xlane.xlu0 %1672  ;;  %v1730_v52 = vsel %vm1711_vm3, %v1729_v43, %v1725_v42 }
 0x53f   : > { %v4656_v41 = vpop.xlane.xlu1 %1674  ;;  %v1779_v5 = vsel %vm1778_vm5, %v1730_v52, %v1777_v2  ;;  %v1752_v13 = vrot.slane %v4650_v38, %v4648_v37  ;;  %v4024_v52 = vmov 0   ;;  %v1818_v2 = vsub.s32 5, %v4538_v62 }
 0x540   : > { %v1756_v14 = vrot.slane %v4656_v41, %v4643_v35  ;;  %v1781_v23 = vsel %vm1780_vm6, %v1739_v58, %v1779_v5  ;;  %3581 = vset.pattern.permute.xlu0 %v4024_v52  ;;  %3580 = vset.pattern.permute.xlu1 %v4024_v52  ;;  %v1806_v58 = vsub.s32 2, %v4538_v62 }
 0x542   : > { %v4666_v47 = vpop.xlane.xlu0 %1668  ;;  %v1757_v60 = vsel %vm1711_vm3, %v1756_v14, %v1752_v13  ;;  %v1822_v14 = vsub.s32 6, %v4538_v62 }
 0x543   : > { %v4670_v53 = vpop.xlane.xlu1 %1670  ;;  %v1743_v55 = vrot.slane %v4666_v47, %v4648_v37 }
 0x544   : > { %v1747_v57 = vrot.slane %v4670_v53, %v4643_v35 }
 0x546   : > { %v4682_v4 = vpop.xlane.xlu0 %1676  ;;  %v1748_v8 = vsel %vm1711_vm3, %v1747_v57, %v1743_v55  ;;  %v1802_v55 = vsub.s32 1, %v4538_v62 }
 0x547   : > { %v1761_v18 = vrot.slane %v4682_v4, %v4648_v37  ;;  %v1783_v25 = vsel %vm1782_vm7, %v1748_v8, %v1781_v23 }
 0x548   : > { %v4686_v10 = vpop.xlane.xlu1 %1678  ;;  %v1785_v43 = vsel %vm1784_vm8, %v1757_v60, %v1783_v25 }
 0x549   : > { %v1765_v17 = vrot.slane %v4686_v10, %v4643_v35 }
 0x54a   : > { %v4697_v20 = vpop.xlane.xlu0 %1680 }
 0x54b   : > { %v1766_v31 = vsel %vm1711_vm3, %v1765_v17, %v1761_v18  ;;  %v1770_v40 = vrot.slane %v4697_v20, %v4648_v37 }
 0x54c   : > { %v4701_v29 = vpop.xlane.xlu1 %1682  ;;  %v1787_v46 = vsel %vm1786_vm9, %v1766_v31, %v1785_v43 }
 0x54d   : > { %v1774_v42 = vrot.slane %v4701_v29, %v4643_v35 }
 0x54f   : > { %v1775_v45 = vsel %vm1711_vm3, %v1774_v42, %v1770_v40  ;;  %v1810_v40 = vsub.s32 3, %v4538_v62 }
 0x550   : > { %v1789_v49 = vsel %vm1788_vm10, %v1775_v45, %v1787_v46 }
 0x551   : > { %v1792_v50 = vsel %vm1791_vm11, %v1789_v49, -inf }
 0x552   : > { %1793 = vmax.xlane.f32.xlu0 %v1792_v50 }
 0x5df   : > { %v1794_v57 = vpop.xlane.xlu0 %1793 }
 0x5e0   : > { %v1799_v61 = vrot.slane %v1794_v57, %v4551_v7  ;;  %v1803_v1 = vrot.slane %v1794_v57, %v1802_v55  ;;  %v4726_v17 = vrot.slane %v1794_v57, %v1818_v2  ;;  %v1807_v25 = vrot.slane %v1794_v57, %v1806_v58 }
 0x5e1   : > { %v1811_v49 = vrot.slane %v1794_v57, %v1810_v40 }
 0x5e2   : > { %v1836_v5 = vsub.f32 %v4629_v6, %v1799_v61  ;;  %v1837_v8 = vsub.f32 %v4631_v27, %v1799_v61  ;;  %v1838_v13 = vsub.f32 %v4627_v26, %v1803_v1  ;;  %v1839_v31 = vsub.f32 %v4633_v28, %v1803_v1 }
 0x5e3   : > { %v1826_v27 = vsub.s32 7, %v4538_v62  ;;  %v4734_v26 = vrot.slane %v1794_v57, %v1822_v14  ;;  %v1846_v60 = vsub.f32 %v4650_v38, %v4726_v17  ;;  %v1840_v42 = vsub.f32 %v4640_v34, %v1807_v25 }
 0x5e4   : > { %v1852_v18 = vmul.f32 1.442695, %v1836_v5  ;;  %v1854_v23 = vmul.f32 1.442695, %v1837_v8  ;;  %v1856_v6 = vmul.f32 1.442695, %v1838_v13  ;;  %v1841_v50 = vsub.f32 %v4645_v36, %v1807_v25 }
 0x5e5   : > { %v1858_v43 = vmul.f32 1.442695, %v1839_v31  ;;  %v1827_v28 = vrot.slane %v1794_v57, %v1826_v27  ;;  %v1848_v45 = vsub.f32 %v4682_v4, %v4734_v26  ;;  %v1872_v46 = vmul.f32 1.442695, %v1846_v60 }
 0x5e6   : > { %3628 = vpow2.f32 %v1852_v18  ;;  %v1860_v38 = vmul.f32 1.442695, %v1840_v42  ;;  %v1814_v4 = vsub.s32 4, %v4538_v62  ;;  %v1842_v5 = vsub.f32 %v4636_v30, %v1811_v49 }
 0x5e7   : > { %3630 = vpow2.f32 %v1854_v23  ;;  %v1850_v34 = vsub.f32 %v4697_v20, %v1827_v28  ;;  %v1876_v61 = vmul.f32 1.442695, %v1848_v45  ;;  %v1862_v8 = vmul.f32 1.442695, %v1841_v50 }
 0x5e8   : > { %3632 = vpow2.f32 %v1856_v6  ;;  %v1815_v20 = vrot.slane %v1794_v57, %v1814_v4  ;;  %v1843_v18 = vsub.f32 %v4638_v32, %v1811_v49  ;;  %v1864_v23 = vmul.f32 1.442695, %v1842_v5 }
 0x5e9   : > { %3634 = vpow2.f32 %v1858_v43  ;;  %v1880_v13 = vmul.f32 1.442695, %v1850_v34  ;;  %v1847_v45 = vsub.f32 %v4656_v41, %v4726_v17  ;;  %v1851_v34 = vsub.f32 %v4701_v29, %v1827_v28 }
 0x5ea   : > { %3636 = vpow2.f32 %v1872_v46  ;;  %v1844_v31 = vsub.f32 %v4666_v47, %v1815_v20  ;;  %v1866_v6 = vmul.f32 1.442695, %v1843_v18  ;;  %v1845_v57 = vsub.f32 %v4670_v53, %v1815_v20 }
 0x5eb   : > { %3638 = vpow2.f32 %v1860_v38  ;;  %v1849_v53 = vsub.f32 %v4686_v10, %v4734_v26  ;;  %v1874_v50 = vmul.f32 1.442695, %v1847_v45 }
 0x5ec   : > { %3640 = vpow2.f32 %v1876_v61  ;;  %v1868_v42 = vmul.f32 1.442695, %v1844_v31  ;;  %v1870_v46 = vmul.f32 1.442695, %v1845_v57  ;;  %v1882_v61 = vmul.f32 1.442695, %v1851_v34 }
 0x5ed   : > { %3642 = vpow2.f32 %v1862_v8  ;;  %v1878_v41 = vmul.f32 1.442695, %v1849_v53 }
 0x5ee   : > { %3644 = vpow2.f32 %v1880_v13 }
 0x5ef   : > { %3646 = vpow2.f32 %v1864_v23 }
 0x5f0   : > { %v4747_v52 = vpop.eup %3628  ;;  %3648 = vpow2.f32 %v1866_v6 }
 0x5f1   : > { %v4750_v1 = vpop.eup %3630  ;;  %1901 = vperm.xlu1 %3580, %v4747_v52   ;;  %3650 = vpow2.f32 %v1868_v42 }
 0x5f2   : > { %1904 = vperm.xlu0 %3581, %v4750_v1   ;;  %v4756_v36 = vpop.eup %3632  ;;  %3652 = vpow2.f32 %v1870_v46 }
 0x5f3   : > { %v4762_v25 = vpop.eup %3634  ;;  %3654 = vpow2.f32 %v1874_v50 }
 0x5f4   : > { %v4765_v30 = vpop.eup %3636  ;;  %3656 = vpow2.f32 %v1878_v41 }
 0x5f5   : > { %1907 = vperm.xlu1 %3580, %v4756_v36   ;;  %v4769_v60 = vpop.eup %3638  ;;  %3658 = vpow2.f32 %v1882_v61 }
 0x5f6   : > { %1931 = vperm.xlu0 %3581, %v4765_v30   ;;  %v4772_v32 = vpop.eup %3640 }
 0x5f7   : > { %v4776_v43 = vpop.eup %3642 }
 0x5f8   : > { %v4779_v47 = vpop.eup %3644 }
 0x5f9   : > { %1910 = vperm.xlu1 %3580, %v4762_v25   ;;  %v4784_v49 = vpop.eup %3646 }
 0x5fa   : > { %1937 = vperm.xlu0 %3581, %v4772_v32   ;;  %v4789_v38 = vpop.eup %3648 }
 0x5fb   : > { %v4793_v17 = vpop.eup %3650 }
 0x5fc   : > { %v4796_v5 = vpop.eup %3652 }
 0x5fd   : > { %1913 = vperm.xlu1 %3580, %v4769_v60   ;;  %v4799_v10 = vpop.eup %3654 }
 0x5fe   : > { %1943 = vperm.xlu0 %3581, %v4779_v47   ;;  %v4802_v26 = vpop.eup %3656 }
 0x5ff   : > { %v4805_v29 = vpop.eup %3658 }
 0x601   : > { %1916 = vperm.xlu1 %3580, %v4776_v43  }
 0x605   : > { %1919 = vperm.xlu1 %3580, %v4784_v49  }
 0x609   : > { %1922 = vperm.xlu1 %3580, %v4789_v38  }
 0x60d   : > { %1925 = vperm.xlu1 %3580, %v4793_v17  }
 0x611   : > { %1928 = vperm.xlu1 %3580, %v4796_v5  }
 0x615   : > { %1934 = vperm.xlu1 %3580, %v4799_v10  }
 0x619   : > { %1940 = vperm.xlu1 %3580, %v4802_v26  }
 0x61d   : > { %1946 = vperm.xlu1 %3580, %v4805_v29  }
 0x670   : > { %v1902_v28 = vpop.permute.xlu1 %1901 }
 0x671   : > { %v1905_v31 = vpop.permute.xlu0 %1904  ;;  %v1951_v61 = vrot.slane %v1902_v28, %v4648_v37 }
 0x672   : > { %v1955_v41 = vrot.slane %v1905_v31, %v4643_v35 }
 0x674   : > { %v1908_v8 = vpop.permute.xlu1 %1907  ;;  %v1956_v28 = vsel %vm1711_vm3, %v1955_v41, %v1951_v61 }
 0x675   : > { %v1932_v42 = vpop.permute.xlu0 %1931  ;;  %v1960_v21 = vrot.slane %v1908_v8, %v4648_v37 }
 0x676   : > { %v1996_v8 = vrot.slane %v1932_v42, %v4648_v37 }
 0x678   : > { %v1911_v13 = vpop.permute.xlu1 %1910 }
 0x679   : > { %v1964_v46 = vrot.slane %v1911_v13, %v4643_v35  ;;  %v1938_v53 = vpop.permute.xlu0 %1937 }
 0x67b   : > { %v1965_v44 = vsel %vm1711_vm3, %v1964_v46, %v1960_v21 }
 0x67c   : > { %v1914_v20 = vpop.permute.xlu1 %1913  ;;  %v2020_v21 = vsel %vm1776_vm4, %v1965_v44, %v1956_v28 }
 0x67d   : > { %v1969_v63 = vrot.slane %v1914_v20, %v4648_v37 }
 0x680   : > { %v1917_v18 = vpop.permute.xlu1 %1916 }
 0x681   : > { %v1973_v50 = vrot.slane %v1917_v18, %v4643_v35 }
 0x683   : > { %v1974_v18 = vsel %vm1711_vm3, %v1973_v50, %v1969_v63 }
 0x684   : > { %v1920_v23 = vpop.permute.xlu1 %1919  ;;  %v2021_v63 = vsel %vm1778_vm5, %v1974_v18, %v2020_v21 }
 0x685   : > { %v1978_v13 = vrot.slane %v1920_v23, %v4648_v37  ;;  %v1944_v23 = vpop.permute.xlu0 %1943 }
 0x688   : > { %v1923_v6 = vpop.permute.xlu1 %1922 }
 0x689   : > { %v1982_v24 = vrot.slane %v1923_v6, %v4643_v35 }
 0x68b   : > { %v1983_v6 = vsel %vm1711_vm3, %v1982_v24, %v1978_v13  ;;  %v2014_v24 = vrot.slane %v1944_v23, %v4648_v37 }
 0x68c   : > { %v1926_v57 = vpop.permute.xlu1 %1925  ;;  %v2022_v50 = vsel %vm1780_vm6, %v1983_v6, %v2021_v63 }
 0x68d   : > { %v1987_v31 = vrot.slane %v1926_v57, %v4648_v37 }
 0x690   : > { %v1929_v45 = vpop.permute.xlu1 %1928 }
 0x691   : > { %v1991_v3 = vrot.slane %v1929_v45, %v4643_v35  ;;  %v2005_v45 = vrot.slane %v1938_v53, %v4648_v37 }
 0x693   : > { %v1992_v46 = vsel %vm1711_vm3, %v1991_v3, %v1987_v31 }
 0x694   : > { %v1935_v34 = vpop.permute.xlu1 %1934 }
 0x695   : > { %v2000_v56 = vrot.slane %v1935_v34, %v4643_v35 }
 0x697   : > { %v2001_v57 = vsel %vm1711_vm3, %v2000_v56, %v1996_v8 }
 0x698   : > { %v1941_v0 = vpop.permute.xlu1 %1940 }
 0x699   : > { %v2009_v20 = vrot.slane %v1941_v0, %v4643_v35  ;;  %v2023_v0 = vsel %vm1782_vm7, %v1992_v46, %v2022_v50 }
 0x69a   : > { %v2024_v44 = vsel %vm1784_vm8, %v2001_v57, %v2023_v0  ;;  %v5103_v0 = vpack.c.bf16 %v4596_v59, %v4588_v51  ;;  %v5104_v51 = vpack.c.bf16 %v4592_v54, %v4584_v48 }
 0x69b   : > { %v2010_v34 = vsel %vm1711_vm3, %v2009_v20, %v2005_v45 }
 0x69c   : > { %v1947_v42 = vpop.permute.xlu1 %1946  ;;  %v2025_v3 = vsel %vm1786_vm9, %v2010_v34, %v2024_v44  ;;  %v5102_v34 = vpack.c.bf16 %v4576_v39, %v4571_v33 }
 0x69d   : > { %v2018_v53 = vrot.slane %v1947_v42, %v4643_v35 }
 0x69f   : > { %v2019_v41 = vsel %vm1711_vm3, %v2018_v53, %v2014_v24 }
 0x6a0   : > { %v2026_v61 = vsel %vm1788_vm10, %v2019_v41, %v2025_v3 }
 0x6a1   : > { %v2028_v56 = vsel %vm1791_vm11, %v2026_v61, 0.0 }
 0x6a2   : > { %2029 = vadd.xlane.f32.xlu0 %v2028_v56 }
 0x72f   : > { %v2030_v13 = vpop.xlane.xlu0 %2029 }
 0x730   : > { %3660 = vrcp.f32 %v2030_v13 }
 0x73a   : > { %v3661_v18 = vpop.eup %3660 }
 0x73b   : > { %v2052_v31 = vrot.slane %v3661_v18, %v1814_v4  ;;  %v2036_v28 = vrot.slane %v3661_v18, %v4551_v7  ;;  %v2064_v20 = vrot.slane %v3661_v18, %v1826_v27  ;;  %v2040_v23 = vrot.slane %v3661_v18, %v1802_v55 }
 0x73d   : > { %v2081_v8 = vmul.f32 %v4793_v17, %v2052_v31  ;;  %v2073_v6 = vmul.f32 %v4747_v52, %v2036_v28  ;;  %v2087_v45 = vmul.f32 %v4779_v47, %v2064_v20  ;;  %v2074_v21 = vmul.f32 %v4750_v1, %v2036_v28 }
 0x73e   : > { %v2075_v7 = vmul.f32 %v4756_v36, %v2040_v23  ;;  %v2076_v4 = vmul.f32 %v4762_v25, %v2040_v23  ;;  %v2044_v52 = vrot.slane %v3661_v18, %v1806_v58  ;;  %v2048_v1 = vrot.slane %v3661_v18, %v1810_v40 }
 0x73f   : > { %2448 = vperm.xlu0 %3581, %v2081_v8   ;;  %2092 = vperm.xlu1 %3580, %v2073_v6   ;;  %v2082_v25 = vmul.f32 %v4796_v5, %v2052_v31  ;;  %v2056_v58 = vrot.slane %v3661_v18, %v1818_v2  ;;  %v2060_v40 = vrot.slane %v3661_v18, %v1822_v14  ;;  %v5100_v14 = vmov 0.0  }
 0x740   : > { %v2077_v27 = vmul.f32 %v4769_v60, %v2044_v52  ;;  %v2078_v47 = vmul.f32 %v4776_v43, %v2044_v52  ;;  %v2079_v55 = vmul.f32 %v4784_v49, %v2048_v1  ;;  %v2080_v36 = vmul.f32 %v4789_v38, %v2048_v1 }
 0x741   : > { %v2083_v60 = vmul.f32 %v4765_v30, %v2056_v58  ;;  %v2084_v43 = vmul.f32 %v4799_v10, %v2056_v58  ;;  %v2085_v49 = vmul.f32 %v4772_v32, %v2060_v40  ;;  %v2086_v38 = vmul.f32 %v4802_v26, %v2060_v40 }
 0x742   : > { %v2088_v17 = vmul.f32 %v4805_v29, %v2064_v20  ;;  %v5101_v32 = vmov 0.0|0.0   ;;  %v5105_v18 = vpack.c.bf16 %v4618_v19, %v4610_v12  ;;  %v5106_v6 = vpack.c.bf16 %v4614_v15, %v4606_v9 }
 0x743   : > { %2715 = vperm.xlu0 %3581, %v2087_v45   ;;  %2095 = vperm.xlu1 %3580, %v2074_v21  }
 0x747   : > { %2181 = vperm.xlu1 %3580, %v2075_v7  }
 0x74b   : > { %2184 = vperm.xlu1 %3580, %v2076_v4  }
 0x74f   : > { %2270 = vperm.xlu1 %3580, %v2077_v27  }
 0x753   : > { %2273 = vperm.xlu1 %3580, %v2078_v47  }
 0x757   : > { %2359 = vperm.xlu1 %3580, %v2079_v55  }
 0x75b   : > { %2362 = vperm.xlu1 %3580, %v2080_v36  }
 0x75f   : > { %2451 = vperm.xlu1 %3580, %v2082_v25  }
 0x763   : > { %2537 = vperm.xlu1 %3580, %v2083_v60  }
 0x767   : > { %2540 = vperm.xlu1 %3580, %v2084_v43  }
 0x76b   : > { %2626 = vperm.xlu1 %3580, %v2085_v49  }
 0x76f   : > { %2629 = vperm.xlu1 %3580, %v2086_v38  }
 0x773   : > { %2718 = vperm.xlu1 %3580, %v2088_v17  }
 0x7be   : > { %v2093_v2 = vpop.permute.xlu1 %2092  ;;  %v2449_v44 = vpop.permute.xlu0 %2448 }
 0x7bf   : > { %v2100_v30 = vrot.slane %v2093_v2, %v4648_v37  ;;  %v2456_v61 = vrot.slane %v2449_v44, %v4648_v37 }
 0x7c2   : > { %v2096_v5 = vpop.permute.xlu1 %2095  ;;  %v2716_v45 = vpop.permute.xlu0 %2715 }
 0x7c3   : > { %v2104_v46 = vrot.slane %v2096_v5, %v4643_v35  ;;  %v2723_v4 = vrot.slane %v2716_v45, %v4648_v37 }
 0x7c5   : > { %v2105_v10 = vsel %vm1711_vm3, %v2104_v46, %v2100_v30 }
 0x7c6   : > { %3381 = vmatmul.mubr.msk.f32.vlgmr.msra.gmra.mrb[24].mxu0 %vm1791_vm11, %v2105_v10  ;;  %v2182_v62 = vpop.permute.xlu1 %2181 }
 0x7c7   : > { %3437 = vmatpush3.bf16.msra.mxu0 %v3436_v22  ;;  %3387 = vmatprep.mubr.msk.f32.mxu0 %vm4021_vm0, %v5100_v14  ;;  %v2189_v29 = vrot.slane %v2182_v62, %v4648_v37 }
 0x7c8   : > { %3438 = vmatprep.subr.bf16.mxu0 %v5101_v32 }
 0x7ca   : > { %v2185_v26 = vpop.permute.xlu1 %2184 }
 0x7cb   : > { %v2193_v63 = vrot.slane %v2185_v26, %v4643_v35 }
 0x7cd   : > { %v2194_v57 = vsel %vm1711_vm3, %v2193_v63, %v2189_v29 }
 0x7ce   : > { %3388 = vmatmul.mubr.msk.f32.vlgmr.msra.gmra.mrb[26].mxu0 %vm1791_vm11, %v2194_v57  ;;  %v2271_v50 = vpop.permute.xlu1 %2270  ;;  %v2825_v21 = vsel %vm1776_vm4, %v2194_v57, %v2105_v10 }
 0x7cf   : > { %3440 = vmatpush3.bf16.msra.mxu0 %v5102_v34  ;;  %3394 = vmatprep.mubr.msk.f32.mxu0 %vm4021_vm0, %v5100_v14  ;;  %v2278_v16 = vrot.slane %v2271_v50, %v4648_v37 }
 0x7d0   : > { %3444 = vmatprep.subr.bf16.mxu0 %v5101_v32 }
 0x7d2   : > { %v2274_v11 = vpop.permute.xlu1 %2273 }
 0x7d3   : > { %v2282_v22 = vrot.slane %v2274_v11, %v4643_v35 }
 0x7d5   : > { %v2283_v42 = vsel %vm1711_vm3, %v2282_v22, %v2278_v16 }
 0x7d6   : > { %3395 = vmatmul.mubr.msk.f32.vlgmr.msra.gmra.mrb[28].mxu0 %vm1791_vm11, %v2283_v42  ;;  %v2360_v24 = vpop.permute.xlu1 %2359  ;;  %v2826_v23 = vsel %vm1778_vm5, %v2283_v42, %v2825_v21 }
 0x7d7   : > { %3446 = vmatpush3.bf16.msra.mxu0 %v5103_v0  ;;  %3408 = vmatprep.mubr.msk.f32.mxu0 %vm4021_vm0, %v5100_v14  ;;  %v2367_v39 = vrot.slane %v2360_v24, %v4648_v37 }
 0x7d8   : > { %3450 = vmatprep.subr.bf16.mxu0 %v5101_v32 }
 0x7da   : > { %v2363_v33 = vpop.permute.xlu1 %2362 }
 0x7db   : > { %v2371_v53 = vrot.slane %v2363_v33, %v4643_v35 }
 0x7dd   : > { %v2372_v41 = vsel %vm1711_vm3, %v2371_v53, %v2367_v39 }
 0x7de   : > { %3402 = vmatmul.mubr.msk.f32.vlgmr.msra.gmra.mrb[36].mxu1 %vm1791_vm11, %v2372_v41  ;;  %v2452_v3 = vpop.permute.xlu1 %2451  ;;  %v2827_v9 = vsel %vm1780_vm6, %v2372_v41, %v2826_v23 }
 0x7df   : > { %3449 = vmatpush3.bf16.msra.mxu1 %v5104_v51  ;;  %v2460_v59 = vrot.slane %v2452_v3, %v4643_v35  ;;  %3415 = vmatprep.mubr.msk.f32.mxu1 %vm4021_vm0, %v5100_v14 }
 0x7e0   : > { %3453 = vmatprep.subr.bf16.mxu1 %v5101_v32 }
 0x7e1   : > { %v2461_v56 = vsel %vm1711_vm3, %v2460_v59, %v2456_v61 }
 0x7e2   : > { %3409 = vmatmul.mubr.msk.f32.vlgmr.msra.gmra.mrb[30].mxu0 %vm1791_vm11, %v2461_v56  ;;  %v2538_v13 = vpop.permute.xlu1 %2537  ;;  %v2828_v52 = vsel %vm1782_vm7, %v2461_v56, %v2827_v9 }
 0x7e3   : > { %3452 = vmatpush3.bf16.msra.mxu0 %v5105_v18  ;;  %3422 = vmatprep.mubr.msk.f32.mxu0 %vm4021_vm0, %v5100_v14  ;;  %v2545_v54 = vrot.slane %v2538_v13, %v4648_v37 }
 0x7e6   : > { %v2541_v48 = vpop.permute.xlu1 %2540 }
 0x7e7   : > { %v2549_v31 = vrot.slane %v2541_v48, %v4643_v35 }
 0x7e9   : > { %v2550_v28 = vsel %vm1711_vm3, %v2549_v31, %v2545_v54 }
 0x7ea   : > { %3416 = vmatmul.mubr.msk.f32.vlgmr.msra.gmra.mrb[38].mxu1 %vm1791_vm11, %v2550_v28  ;;  %v2627_v8 = vpop.permute.xlu1 %2626  ;;  %v2829_v47 = vsel %vm1784_vm8, %v2550_v28, %v2828_v52 }
 0x7eb   : > { %3455 = vmatpush3.bf16.msra.mxu1 %v5106_v6  ;;  %3429 = vmatprep.mubr.msk.f32.mxu1 %vm4021_vm0, %v5100_v14  ;;  %v2634_v19 = vrot.slane %v2627_v8, %v4648_v37 }
 0x7ee   : > { %v2630_v12 = vpop.permute.xlu1 %2629 }
 0x7ef   : > { %v2638_v20 = vrot.slane %v2630_v12, %v4643_v35 }
 0x7f1   : > { %v2639_v7 = vsel %vm1711_vm3, %v2638_v20, %v2634_v19 }
 0x7f2   : > { %3423 = vmatmul.mubr.msk.f32.vlgmr.msra.gmra.mrb[32].mxu0 %vm1791_vm11, %v2639_v7  ;;  %v2719_v15 = vpop.permute.xlu1 %2718  ;;  %v2830_v1 = vsel %vm1786_vm9, %v2639_v7, %v2829_v47 }
 0x7f3   : > { %v2727_v27 = vrot.slane %v2719_v15, %v4643_v35 }
 0x7f5   : > { %v2728_v55 = vsel %vm1711_vm3, %v2727_v27, %v2723_v4 }
 0x7f6   : > { %v2831_v36 = vsel %vm1788_vm10, %v2728_v55, %v2830_v1  ;;  %3430 = vmatmul.mubr.msk.f32.vlgmr.msra.gmra.mrb[40].mxu1 %vm1791_vm11, %v2728_v55 }
 0x7f7   : > { %2833 = vst.msk [vmem:[%s648_s16] sm:$0xff] %vm1791_vm11, %v2831_v36 }
 0x7f8   : > { %3903 = shalt.err (!%p3900_p3)
}
 0x7f9   : > { %s3904_s2 = scalar_lea.hbm %s4954_s6, 128  ;;  %s3908_s16 = scalar_lea.hbm %s5107_s13, 256 }
 0x7fa   : > { %p3905_p12 = scmp.ne.s32.totalorder %s4954_s6, %s3904_s2  ;;  %p3909_p0 = scmp.lt.u32.totalorder %s4954_s6, %s5107_s13 }
 0x7fb   : > { %p3910_p6 = scmp.lt.u32.totalorder %s3908_s16, %s3904_s2  ;;  %p3912_p4 = scmp.lt.u32.totalorder %s3904_s2, %s4954_s6 }
 0x7fc   : > { %p3906_p1 = pnand %p3905_p12, %p5108_p10 }
 0x7fd   : > { %p3911_p2 = por %p3910_p6, %p3909_p0 }
 0x7fe   : > { %p3907_p13 = pneg %p3906_p1 }
 0x7ff   : > { %p3913_p5 = por %p3912_p4, %p3911_p2 }
 0x801   : > { %p3914_p7 = pnand %p3913_p5, %p3907_p13 }
 0x803   : > { %3917 = shalt.err (!%p3914_p7)
}
 0x804   : > { %3485 = dma.vmem_to_hbm [thread:$0]  (%p5108_p10), %s2867_s4, 128, %s4954_s6, %s2840_s17  }
 0x805   : > { %s641_s6 = scalar_lea.vmem [#allocation16], %s3072_s23  ;;  %s5109_s30 = sld [smem:[#allocation36_spill]] }
 0x806   : > { %s2853_s4 = sshll.u32 %s641_s6, 4  ;;  %s2835_s25 = scalar_lea.sflag [#allocation4], %s4424_s15  ;;  %s4989_s4 = int_to_ptr.vmem [resolvable:$true] %s2853_s4 }
 0x807   : > { %s3918_s23 = scalar_lea.vmem %s4989_s4, 128  ;;  %s4026_s24 = smov [#allocation16]  }
 0x808   : > { %p3919_p9 = scmp.ne.s32.totalorder %s4989_s4, %s3918_s23  ;;  %s3922_s2 = sshll.u32 %s4026_s24, 4  ;;  %s3923_s2 = int_to_ptr.vmem [resolvable:$false] %s3922_s2 }
 0x809   : > { %s3924_s11 = scalar_lea.vmem %s3923_s2, 256  ;;  %p3925_p3 = scmp.lt.s32.totalorder %s4989_s4, %s3923_s2 }
 0x80a   : > { %p3920_p8 = pnand %p3919_p9, %p5108_p10  ;;  %p3926_p12 = scmp.lt.s32.totalorder %s3924_s11, %s3918_s23 }
 0x80b   : > { %s4987_s0 = scalar_lea.hbm %s5109_s30, %s3145_s27 }
 0x80c   : > { %p3921_p11 = pneg %p3920_p8  ;;  %p3927_p1 = por %p3926_p12, %p3925_p3 }
 0x80e   : > { %p3928_p13 = pnand %p3927_p1, %p3921_p11 }
 0x899   : > { %v2174_v35 = vpop.f32.mrb[24].mxu0 }
 0x89a   : > { %v3382_v37 = vpop.f32.mrb[25].mxu0 }
 0x8a1   : > { %v2263_v25 = vpop.f32.mrb[26].mxu0 }
 0x8a2   : > { %v2809_v58 = vrot.slane %v2263_v25, 7  ;;  %v3389_v60 = vpop.f32.mrb[27].mxu0 }
 0x8a4   : > { %v2810_v43 = vsel %vm1776_vm4, %v2809_v58, %v2174_v35 }
 0x8a9   : > { %v2352_v40 = vpop.f32.mrb[28].mxu0 }
 0x8aa   : > { %v2811_v49 = vrot.slane %v2352_v40, 6  ;;  %v3396_v38 = vpop.f32.mrb[29].mxu0 }
 0x8ac   : > { %v2812_v17 = vsel %vm1778_vm5, %v2811_v49, %v2810_v43 }
 0x8b1   : > { %v2441_v2 = vpop.f32.mrb[36].mxu1 }
 0x8b2   : > { %v2813_v5 = vrot.slane %v2441_v2, 5  ;;  %v3403_v30 = vpop.f32.mrb[37].mxu1 }
 0x8b4   : > { %v2814_v46 = vsel %vm1780_vm6, %v2813_v5, %v2812_v17 }
 0x8b5   : > { %v2530_v10 = vpop.f32.mrb[30].mxu0 }
 0x8b6   : > { %v2815_v62 = vrot.slane %v2530_v10, 4  ;;  %v3410_v14 = vpop.f32.mrb[31].mxu0 }
 0x8b8   : > { %v2816_v32 = vsel %vm1782_vm7, %v2815_v62, %v2814_v46 }
 0x8bd   : > { %v2619_v26 = vpop.f32.mrb[38].mxu1 }
 0x8be   : > { %v2817_v29 = vrot.slane %v2619_v26, 3  ;;  %v3417_v63 = vpop.f32.mrb[39].mxu1 }
 0x8c0   : > { %v2818_v57 = vsel %vm1784_vm8, %v2817_v29, %v2816_v32 }
 0x8c5   : > { %v2708_v50 = vpop.f32.mrb[32].mxu0 }
 0x8c6   : > { %v2819_v34 = vrot.slane %v2708_v50, 2  ;;  %v3424_v11 = vpop.f32.mrb[33].mxu0 }
 0x8c8   : > { %v2820_v16 = vsel %vm1786_vm9, %v2819_v34, %v2818_v57 }
 0x8c9   : > { %v2797_v22 = vpop.f32.mrb[40].mxu1 }
 0x8ca   : > { %v2821_v42 = vrot.slane %v2797_v22, 1  ;;  %v3431_v24 = vpop.f32.mrb[41].mxu1 }
 0x8cc   : > { %v2822_v0 = vsel %vm1788_vm10, %v2821_v42, %v2820_v16 }
 0x8cd   : > { %2824 = vst [vmem:[%s641_s6] sm:$0xff] %v2822_v0 }
 0x8ce   : > { %3931 = shalt.err (!%p3928_p13)
}
 0x8cf   : > { %s3932_s15 = scalar_lea.hbm %s4987_s0, 128  ;;  %s3936_s16 = scalar_lea.hbm %s5109_s30, 256 }
 0x8d0   : > { %p3933_p0 = scmp.ne.s32.totalorder %s4987_s0, %s3932_s15  ;;  %p3937_p4 = scmp.lt.u32.totalorder %s4987_s0, %s5109_s30 }
 0x8d1   : > { %p3938_p5 = scmp.lt.u32.totalorder %s3936_s16, %s3932_s15  ;;  %p3940_p9 = scmp.lt.u32.totalorder %s3932_s15, %s4987_s0 }
 0x8d2   : > { %p3934_p6 = pnand %p3933_p0, %p5108_p10 }
 0x8d3   : > { %p3939_p7 = por %p3938_p5, %p3937_p4 }
 0x8d4   : > { %p3935_p2 = pneg %p3934_p6 }
 0x8d5   : > { %p3941_p8 = por %p3940_p9, %p3939_p7 }
 0x8d7   : > { %p3942_p11 = pnand %p3941_p8, %p3935_p2 }
 0x8d9   : > { %3945 = shalt.err (!%p3942_p11)
}
 0x8da   : > { %3484 = dma.vmem_to_hbm [thread:$0]  (%p5108_p10), %s4989_s4, 128, %s4987_s0, %s2835_s25  }
 0x8db PF: > { %s2878_s6 = sand.u32 1, %s3996_s18   ;;  %p5110_p3 = scmp.ne.s32.totalorder %s5080_s29, 0 }
 0x8dc   : > { %p5111_p12 = scmp.ge.s32.totalorder %s4008_s21, 2  ;;  %s2879_s17 = scalar_lea.sflag [#allocation4], %s2878_s6 }
 0x8de   : > { %p3515_p1 = pnand %p5111_p12, %p5110_p3 }
 0x8e0   : > { %3987 = dma.done.wait (!%p3515_p1), %s2879_s17, 128  }
 0x8e1   : > { %3989 = vsyncadd (!%p3515_p1), %s2879_s17, 4294967168  ;;  %s2888_s9 = scalar_lea.sflag [#allocation18], %s2878_s6 }
 0x8e2   : > { %3991 = dma.done.wait (!%p3515_p1), %s2888_s9, 128  }
 0x8e3   : > { %3993 = vsyncadd (!%p3515_p1), %s2888_s9, 4294967168  ;;  %p38_p10 = scmp.ge.s32.totalorder %s4301_s26, 4   ;;  %s5112_s18 = smov %s4000_s19 }
 0x8e4   : > { %s5113_s19 = smov %s4004_s20  ;;  %s5114_s20 = smov %s4312_s7 }
 0x8e5   : > { %s5115_s21 = smov %s4301_s26  ;;  %40 = sbr.rel (!%p38_p10) target bundleno = 24 (0x18), region = 175 }
 0x8ec   :  { %2893 = vsyncpa [#allocation3], 1 }
 0x8ed   :  { %2895 = vsyncpa [#allocation3 + $0x1], 1 }
 0x8ee   :  { %2896 = vsyncpa [#allocation6], 1 }
 0x8ef   :  { %2898 = vsyncpa [#allocation6 + $0x1], 1 }
 0x8f0   :  { %2899 = vsyncpa [#allocation9], 1 }
 0x8f1   :  { %2900 = vsyncpa [#allocation12], 1 }
 0x8f2   :  { %2901 = vsyncpa [#allocation15], 1 }
 0x8f3   :  { %2902 = vsyncpa [#allocation4], 1 }
 0x8f4   :  { %2904 = vsyncpa [#allocation4 + $0x1], 1 }
 0x8f5   :  { %2905 = vsyncpa [#allocation18], 1 }
 0x8f6   :  { %2907 = vsyncpa [#allocation18 + $0x1], 1 }

</bundles_post_ra>
